<compile_context>
chip_gen: v6e
topology: v6e:2x2x1
jax: 0.10.0
libtpu: 0.0.40
codegen_flags: <defaults>
</compile_context>

<pallas_src>
import jax
import jax.numpy as jnp
from jax.experimental import pallas as pl
from jax.experimental.pallas import tpu as pltpu  # noqa: F401 (kept for future batch-grid use on v7x)

HIDDEN = 128
PROP_STEP = 5
OUT_VEL_SIZE = 3
OUT_PAD = 128           # lane-dense output width (multiple of 128)


def _mm(x, w, b=None):
    y = jnp.dot(x, w, preferred_element_type=jnp.float32)
    return y if b is None else y + b


def _first_layer(x, w, b):
    # Degenerate K==1 contraction -> VPU broadcast multiply (skips the MXU).
    if w.shape[0] == 1:
        return x * w + b
    return _mm(x, w, b)


def propnet_kernel(rel_ref, obj_ref, S_ref, R_ref, RT_ref,
                   rm_w1, rm_b1, rm_w2, rm_b2, rm_w3, rm_b3,
                   om_w1, om_b1, om_w2, om_b2,
                   w_rel, w_sr, rmp_b,
                   w_obj, w_eff, w_prop, omp_b,
                   ov_w1, ov_b1, ov_w2, ov_b2,
                   out_ref):
    relu = jax.nn.relu
    H = rmp_b.shape[-1]

    S = S_ref[...]        # (B*R, B*O)  block-diagonal sender adjacency
    Rm = R_ref[...]       # (B*R, B*O)  block-diagonal receiver adjacency
    RmT = RT_ref[...]     # (B*O, B*R)  its transpose (built once in prep)

    def dot(a, b):
        return jnp.dot(a, b, preferred_element_type=jnp.float32)

    # ---- encoders, flat 2-D rows -----------------------------------------
    h = relu(_first_layer(rel_ref[...], rm_w1[...], rm_b1[...]))   # (B*R, H)
    h = relu(_mm(h, rm_w2[...], rm_b2[...]))
    rel_enc = relu(_mm(h, rm_w3[...], rm_b3[...]))                 # (B*R, H)

    h = relu(_first_layer(obj_ref[...], om_w1[...], om_b1[...]))   # (B*O, H)
    obj_enc = relu(_mm(h, om_w2[...], om_b2[...]))                 # (B*O, H)

    # ---- loop-invariant halves of rmp / omp (hoisted) ---------------------
    rel_base = _mm(rel_enc, w_rel[...], rmp_b[...])                # (B*R, H)
    obj_base = _mm(obj_enc, w_obj[...], omp_b[...])                # (B*O, H)

    w_sr_v = w_sr[...]       # (H, 2H) = [w_send | w_recv]
    w_eff_v = w_eff[...]
    w_prop_v = w_prop[...]

    # ---- propagation step 0 peeled (prop == 0) ----------------------------
    rel_out = relu(rel_base)                                       # (B*R, H)
    eff = dot(RmT, rel_out)                                        # (B*O, H)
    prop = relu(obj_base + dot(eff, w_eff_v))                      # (B*O, H)

    # ---- remaining propagation steps (static unroll), all 2-D matmuls -----
    for _ in range(PROP_STEP - 1):
        y = dot(prop, w_sr_v)                                      # (B*O, 2H)
        rel_out = relu(rel_base + dot(S, y[:, :H]) + dot(Rm, y[:, H:]))
        eff = dot(RmT, rel_out)                                    # (B*O, H)
        x = obj_base + dot(eff, w_eff_v) + dot(prop, w_prop_v)
        prop = relu(x + prop)

    # ---- non-temporal 'out_vel' head, lane-dense (padded) output ----------
    h = relu(_mm(prop, ov_w1[...], ov_b1[...]))
    out_ref[...] = _mm(h, ov_w2[...], ov_b2[...])                  # (B*O, OUT_PAD)


# ---------------------------------------------------------------------------
# One-time preprocessing (hoisted out of the per-call jitted path).
# ---------------------------------------------------------------------------
def prepare_params(params):
    """Split the concat-weights, fuse [w_send|w_recv], pad the out_vel head."""
    H = HIDDEN
    rmp_w, omp_w = params["rmp_w"], params["omp_w"]
    kp = {
        "rm_w1": params["rm_w1"], "rm_b1": params["rm_b1"],
        "rm_w2": params["rm_w2"], "rm_b2": params["rm_b2"],
        "rm_w3": params["rm_w3"], "rm_b3": params["rm_b3"],
        "om_w1": params["om_w1"], "om_b1": params["om_b1"],
        "om_w2": params["om_w2"], "om_b2": params["om_b2"],
        "w_rel": rmp_w[:H],
        # Fused sender/receiver projection: y = prop @ [w_send | w_recv]
        "w_sr": jnp.concatenate([rmp_w[H:2 * H], rmp_w[2 * H:]], axis=1),
        "rmp_b": params["rmp_b"],
        "w_obj": omp_w[:H],
        "w_eff": omp_w[H:2 * H],
        "w_prop": omp_w[2 * H:],
        "omp_b": params["omp_b"],
        "ov_w1": params["ov_w1"], "ov_b1": params["ov_b1"],
        # Zero-padded head so the kernel's final store is an unmasked,
        # lane-dense vst; the wrapper slices back to OUT_VEL_SIZE.
        "ov_w2p": jnp.zeros((H, OUT_PAD), jnp.float32).at[:, :OUT_VEL_SIZE].set(params["ov_w2"]),
        "ov_b2p": jnp.zeros((1, OUT_PAD), jnp.float32).at[:, :OUT_VEL_SIZE].set(params["ov_b2"]),
    }
    return kp


def prepare_graph(sender_relations, receiver_relations):
    """Block-diagonalize the adjacency once: (B,R,O) -> (B*R, B*O) so every
    in-kernel aggregation is a single flat 2-D matmul (no batched einsums)."""
    B, R, O = sender_relations.shape
    eye = jnp.eye(B, dtype=jnp.float32)

    def block_diag(a):                      # out[b*R+r, c*O+o] = δ_{bc} a[b,r,o]
        return jnp.einsum('bc,bro->brco', eye, a.astype(jnp.float32)).reshape(B * R, B * O)

    S_bd = block_diag(sender_relations)
    Rm_bd = block_diag(receiver_relations)
    return S_bd, Rm_bd, Rm_bd.T


# ---------------------------------------------------------------------------
# Per-call forward: passes pre-materialized arrays straight to pallas_call.
# ---------------------------------------------------------------------------
@jax.jit
def propnet_forward(rel_data, obj_data, S_bd, Rm_bd, RmT_bd, kp):
    B, R, rd = rel_data.shape
    _, O, od = obj_data.shape

    args = (rel_data.reshape(B * R, rd), obj_data.reshape(B * O, od),
            S_bd, Rm_bd, RmT_bd,
            kp["rm_w1"], kp["rm_b1"], kp["rm_w2"], kp["rm_b2"],
            kp["rm_w3"], kp["rm_b3"],
            kp["om_w1"], kp["om_b1"], kp["om_w2"], kp["om_b2"],
            kp["w_rel"], kp["w_sr"], kp["rmp_b"],
            kp["w_obj"], kp["w_eff"], kp["w_prop"], kp["omp_b"],
            kp["ov_w1"], kp["ov_b1"], kp["ov_w2p"], kp["ov_b2p"])

    # Grid-less single invocation: the whole problem (~0.8 MB weights + <0.1 MB
    # activations) fits trivially in VMEM on every TPU generation and the
    # kernel is latency-bound, so any grid would be pure pipeline overhead.
    out = pl.pallas_call(
        propnet_kernel,
        out_shape=jax.ShapeDtypeStruct((B * O, OUT_PAD), jnp.float32),
    )(*args)
    return out.reshape(B, O, OUT_PAD)[..., :OUT_VEL_SIZE]


# ---------------------------------------------------------------------------
# Synthetic init + pure-JAX reference (mirrors the PyTorch module).
# ---------------------------------------------------------------------------
def init_params(key, relation_dim, object_dim, hidden):
    """Deterministic synthetic init (xavier-ish weights, small random biases)."""
    shapes = {
        "rm_w1": (relation_dim, hidden), "rm_w2": (hidden, hidden), "rm_w3": (hidden, hidden),
        "om_w1": (object_dim, hidden), "om_w2": (hidden, hidden),
        "rmp_w": (3 * hidden, hidden),
        "omp_w": (3 * hidden, hidden),
        "ov_w1": (hidden, hidden), "ov_w2": (hidden, OUT_VEL_SIZE),
    }
    params = {}
    names = sorted(shapes)
    keys = jax.random.split(key, 2 * len(names))
    for i, name in enumerate(names):
        fan_in, fan_out = shapes[name]
        scale = (2.0 / (fan_in + fan_out)) ** 0.5
        params[name] = scale * jax.random.normal(keys[2 * i], shapes[name], jnp.float32)
        params[name.replace("_w", "_b")] = 0.05 * jax.random.normal(
            keys[2 * i + 1], (1, fan_out), jnp.float32)
    return params


def propnet_reference(rel_data, obj_data, S, Rm, p):
    """Pure-JAX reference mirroring PropagationNetwork.forward (eval, temporal=False)."""
    relu = jax.nn.relu
    Rm_T = jnp.swapaxes(Rm, -1, -2)

    h = relu(rel_data @ p["rm_w1"] + p["rm_b1"])
    h = relu(h @ p["rm_w2"] + p["rm_b2"])
    rel_enc = relu(h @ p["rm_w3"] + p["rm_b3"])

    h = relu(obj_data @ p["om_w1"] + p["om_b1"])
    obj_enc = relu(h @ p["om_w2"] + p["om_b2"])

    prop = jnp.zeros(obj_data.shape[:-1] + (HIDDEN,), jnp.float32)
    for _ in range(PROP_STEP):
        senders_prop = S @ prop
        receivers_prop = Rm @ prop
        rmp_vec = jnp.concatenate([rel_enc, senders_prop, receivers_prop], -1)
        rel_out = relu(rmp_vec @ p["rmp_w"] + p["rmp_b"])
        eff = Rm_T @ rel_out
        omp_vec = jnp.concatenate([obj_enc, eff, prop], -1)
        x = omp_vec @ p["omp_w"] + p["omp_b"]
        prop = relu(x + prop)

    h = relu(prop @ p["ov_w1"] + p["ov_b1"])
    return h @ p["ov_w2"] + p["ov_b2"]


if __name__ == "__main__":
    B, O, R = 2, 8, 16
    relation_dim, object_dim = 1, 1

    key = jax.random.PRNGKey(0)
    k1, k2, k3, k4, kp_key = jax.random.split(key, 5)

    rel_data = jax.random.normal(k1, (B, R, relation_dim), jnp.float32)
    obj_data = jax.random.normal(k2, (B, O, object_dim), jnp.float32)
    sender_relations = (jax.random.uniform(k3, (B, R, O)) > 0.7).astype(jnp.float32)
    receiver_relations = (jax.random.uniform(k4, (B, R, O)) > 0.7).astype(jnp.float32)

    params = init_params(kp_key, relation_dim, object_dim, HIDDEN)

    # One-time preprocessing (outside the per-call path).
    kparams = prepare_params(params)
    S_bd, Rm_bd, RmT_bd = prepare_graph(sender_relations, receiver_relations)

    out = propnet_forward(rel_data, obj_data, S_bd, Rm_bd, RmT_bd, kparams)
    out = jax.block_until_ready(out)

    ref = propnet_reference(rel_data, obj_data, sender_relations, receiver_relations, params)
    assert out.shape == (B, O, OUT_VEL_SIZE), out.shape
    assert jnp.allclose(out, ref, atol=1e-4, rtol=1e-4), float(jnp.max(jnp.abs(out - ref)))

    print("KERNEL_OK")
</pallas_src>

<mosaic_0001>
module attributes {stable_mosaic.version = 11 : i64} {
  func.func @propnet_kernel(%arg0: memref<32x1xf32, #tpu.memory_space<vmem>>, %arg1: memref<16x1xf32, #tpu.memory_space<vmem>>, %arg2: memref<32x16xf32, #tpu.memory_space<vmem>>, %arg3: memref<32x16xf32, #tpu.memory_space<vmem>>, %arg4: memref<16x32xf32, #tpu.memory_space<vmem>>, %arg5: memref<1x128xf32, #tpu.memory_space<vmem>>, %arg6: memref<1x128xf32, #tpu.memory_space<vmem>>, %arg7: memref<128x128xf32, #tpu.memory_space<vmem>>, %arg8: memref<1x128xf32, #tpu.memory_space<vmem>>, %arg9: memref<128x128xf32, #tpu.memory_space<vmem>>, %arg10: memref<1x128xf32, #tpu.memory_space<vmem>>, %arg11: memref<1x128xf32, #tpu.memory_space<vmem>>, %arg12: memref<1x128xf32, #tpu.memory_space<vmem>>, %arg13: memref<128x128xf32, #tpu.memory_space<vmem>>, %arg14: memref<1x128xf32, #tpu.memory_space<vmem>>, %arg15: memref<128x128xf32, #tpu.memory_space<vmem>>, %arg16: memref<128x256xf32, #tpu.memory_space<vmem>>, %arg17: memref<1x128xf32, #tpu.memory_space<vmem>>, %arg18: memref<128x128xf32, #tpu.memory_space<vmem>>, %arg19: memref<128x128xf32, #tpu.memory_space<vmem>>, %arg20: memref<128x128xf32, #tpu.memory_space<vmem>>, %arg21: memref<1x128xf32, #tpu.memory_space<vmem>>, %arg22: memref<128x128xf32, #tpu.memory_space<vmem>>, %arg23: memref<1x128xf32, #tpu.memory_space<vmem>>, %arg24: memref<128x128xf32, #tpu.memory_space<vmem>>, %arg25: memref<1x128xf32, #tpu.memory_space<vmem>>, %arg26: memref<16x128xf32, #tpu.memory_space<vmem>>) attributes {dimension_semantics = [], scalar_prefetch = 0 : i64, scratch_operands = 0 : i64, tpu.core_type = #tpu.core_type<tc>} {
    %c0 = arith.constant 0 : index
    %c0_0 = arith.constant 0 : index
    %0 = vector.load %arg2[%c0, %c0_0] : memref<32x16xf32, #tpu.memory_space<vmem>>, vector<32x16xf32>
    %c0_1 = arith.constant 0 : index
    %c0_2 = arith.constant 0 : index
    %1 = vector.load %arg3[%c0_1, %c0_2] : memref<32x16xf32, #tpu.memory_space<vmem>>, vector<32x16xf32>
    %c0_3 = arith.constant 0 : index
    %c0_4 = arith.constant 0 : index
    %2 = vector.load %arg4[%c0_3, %c0_4] : memref<16x32xf32, #tpu.memory_space<vmem>>, vector<16x32xf32>
    %c0_5 = arith.constant 0 : index
    %c0_6 = arith.constant 0 : index
    %3 = vector.load %arg0[%c0_5, %c0_6] : memref<32x1xf32, #tpu.memory_space<vmem>>, vector<32x1xf32>
    %c0_7 = arith.constant 0 : index
    %c0_8 = arith.constant 0 : index
    %4 = vector.load %arg5[%c0_7, %c0_8] : memref<1x128xf32, #tpu.memory_space<vmem>>, vector<1x128xf32>
    %c0_9 = arith.constant 0 : index
    %c0_10 = arith.constant 0 : index
    %5 = vector.load %arg6[%c0_9, %c0_10] : memref<1x128xf32, #tpu.memory_space<vmem>>, vector<1x128xf32>
    %6 = vector.broadcast %3 : vector<32x1xf32> to vector<32x128xf32>
    %7 = vector.broadcast %4 : vector<1x128xf32> to vector<32x128xf32>
    %8 = arith.mulf %6, %7 : vector<32x128xf32>
    %9 = vector.broadcast %5 : vector<1x128xf32> to vector<32x128xf32>
    %10 = arith.addf %8, %9 : vector<32x128xf32>
    %cst = arith.constant 0.000000e+00 : f32
    %11 = vector.broadcast %cst : f32 to vector<32x128xf32>
    %12 = arith.maximumf %10, %11 : vector<32x128xf32>
    %c0_11 = arith.constant 0 : index
    %c0_12 = arith.constant 0 : index
    %13 = vector.load %arg7[%c0_11, %c0_12] : memref<128x128xf32, #tpu.memory_space<vmem>>, vector<128x128xf32>
    %c0_13 = arith.constant 0 : index
    %c0_14 = arith.constant 0 : index
    %14 = vector.load %arg8[%c0_13, %c0_14] : memref<1x128xf32, #tpu.memory_space<vmem>>, vector<1x128xf32>
    %cst_15 = arith.constant dense<0.000000e+00> : vector<32x128xf32>
    %15 = tpu.matmul %12, %13, %cst_15 {dimension_numbers = #tpu.dot_dimension_numbers<[1], [0], [0], [1], [0, 0, 1, 1], [], []>} : vector<32x128xf32>, vector<128x128xf32>, vector<32x128xf32> -> vector<32x128xf32>
    %16 = vector.broadcast %14 : vector<1x128xf32> to vector<32x128xf32>
    %17 = arith.addf %15, %16 : vector<32x128xf32>
    %cst_16 = arith.constant 0.000000e+00 : f32
    %18 = vector.broadcast %cst_16 : f32 to vector<32x128xf32>
    %19 = arith.maximumf %17, %18 : vector<32x128xf32>
    %c0_17 = arith.constant 0 : index
    %c0_18 = arith.constant 0 : index
    %20 = vector.load %arg9[%c0_17, %c0_18] : memref<128x128xf32, #tpu.memory_space<vmem>>, vector<128x128xf32>
    %c0_19 = arith.constant 0 : index
    %c0_20 = arith.constant 0 : index
    %21 = vector.load %arg10[%c0_19, %c0_20] : memref<1x128xf32, #tpu.memory_space<vmem>>, vector<1x128xf32>
    %cst_21 = arith.constant dense<0.000000e+00> : vector<32x128xf32>
    %22 = tpu.matmul %19, %20, %cst_21 {dimension_numbers = #tpu.dot_dimension_numbers<[1], [0], [0], [1], [0, 0, 1, 1], [], []>} : vector<32x128xf32>, vector<128x128xf32>, vector<32x128xf32> -> vector<32x128xf32>
    %23 = vector.broadcast %21 : vector<1x128xf32> to vector<32x128xf32>
    %24 = arith.addf %22, %23 : vector<32x128xf32>
    %cst_22 = arith.constant 0.000000e+00 : f32
    %25 = vector.broadcast %cst_22 : f32 to vector<32x128xf32>
    %26 = arith.maximumf %24, %25 : vector<32x128xf32>
    %c0_23 = arith.constant 0 : index
    %c0_24 = arith.constant 0 : index
    %27 = vector.load %arg1[%c0_23, %c0_24] : memref<16x1xf32, #tpu.memory_space<vmem>>, vector<16x1xf32>
    %c0_25 = arith.constant 0 : index
    %c0_26 = arith.constant 0 : index
    %28 = vector.load %arg11[%c0_25, %c0_26] : memref<1x128xf32, #tpu.memory_space<vmem>>, vector<1x128xf32>
    %c0_27 = arith.constant 0 : index
    %c0_28 = arith.constant 0 : index
    %29 = vector.load %arg12[%c0_27, %c0_28] : memref<1x128xf32, #tpu.memory_space<vmem>>, vector<1x128xf32>
    %30 = vector.broadcast %27 : vector<16x1xf32> to vector<16x128xf32>
    %31 = vector.broadcast %28 : vector<1x128xf32> to vector<16x128xf32>
    %32 = arith.mulf %30, %31 : vector<16x128xf32>
    %33 = vector.broadcast %29 : vector<1x128xf32> to vector<16x128xf32>
    %34 = arith.addf %32, %33 : vector<16x128xf32>
    %cst_29 = arith.constant 0.000000e+00 : f32
    %35 = vector.broadcast %cst_29 : f32 to vector<16x128xf32>
    %36 = arith.maximumf %34, %35 : vector<16x128xf32>
    %c0_30 = arith.constant 0 : index
    %c0_31 = arith.constant 0 : index
    %37 = vector.load %arg13[%c0_30, %c0_31] : memref<128x128xf32, #tpu.memory_space<vmem>>, vector<128x128xf32>
    %c0_32 = arith.constant 0 : index
    %c0_33 = arith.constant 0 : index
    %38 = vector.load %arg14[%c0_32, %c0_33] : memref<1x128xf32, #tpu.memory_space<vmem>>, vector<1x128xf32>
    %cst_34 = arith.constant dense<0.000000e+00> : vector<16x128xf32>
    %39 = tpu.matmul %36, %37, %cst_34 {dimension_numbers = #tpu.dot_dimension_numbers<[1], [0], [0], [1], [0, 0, 1, 1], [], []>} : vector<16x128xf32>, vector<128x128xf32>, vector<16x128xf32> -> vector<16x128xf32>
    %40 = vector.broadcast %38 : vector<1x128xf32> to vector<16x128xf32>
    %41 = arith.addf %39, %40 : vector<16x128xf32>
    %cst_35 = arith.constant 0.000000e+00 : f32
    %42 = vector.broadcast %cst_35 : f32 to vector<16x128xf32>
    %43 = arith.maximumf %41, %42 : vector<16x128xf32>
    %c0_36 = arith.constant 0 : index
    %c0_37 = arith.constant 0 : index
    %44 = vector.load %arg15[%c0_36, %c0_37] : memref<128x128xf32, #tpu.memory_space<vmem>>, vector<128x128xf32>
    %c0_38 = arith.constant 0 : index
    %c0_39 = arith.constant 0 : index
    %45 = vector.load %arg17[%c0_38, %c0_39] : memref<1x128xf32, #tpu.memory_space<vmem>>, vector<1x128xf32>
    %cst_40 = arith.constant dense<0.000000e+00> : vector<32x128xf32>
    %46 = tpu.matmul %26, %44, %cst_40 {dimension_numbers = #tpu.dot_dimension_numbers<[1], [0], [0], [1], [0, 0, 1, 1], [], []>} : vector<32x128xf32>, vector<128x128xf32>, vector<32x128xf32> -> vector<32x128xf32>
    %47 = vector.broadcast %45 : vector<1x128xf32> to vector<32x128xf32>
    %48 = arith.addf %46, %47 : vector<32x128xf32>
    %c0_41 = arith.constant 0 : index
    %c0_42 = arith.constant 0 : index
    %49 = vector.load %arg18[%c0_41, %c0_42] : memref<128x128xf32, #tpu.memory_space<vmem>>, vector<128x128xf32>
    %c0_43 = arith.constant 0 : index
    %c0_44 = arith.constant 0 : index
    %50 = vector.load %arg21[%c0_43, %c0_44] : memref<1x128xf32, #tpu.memory_space<vmem>>, vector<1x128xf32>
    %cst_45 = arith.constant dense<0.000000e+00> : vector<16x128xf32>
    %51 = tpu.matmul %43, %49, %cst_45 {dimension_numbers = #tpu.dot_dimension_numbers<[1], [0], [0], [1], [0, 0, 1, 1], [], []>} : vector<16x128xf32>, vector<128x128xf32>, vector<16x128xf32> -> vector<16x128xf32>
    %52 = vector.broadcast %50 : vector<1x128xf32> to vector<16x128xf32>
    %53 = arith.addf %51, %52 : vector<16x128xf32>
    %c0_46 = arith.constant 0 : index
    %c0_47 = arith.constant 0 : index
    %54 = vector.load %arg16[%c0_46, %c0_47] : memref<128x256xf32, #tpu.memory_space<vmem>>, vector<128x256xf32>
    %c0_48 = arith.constant 0 : index
    %c0_49 = arith.constant 0 : index
    %55 = vector.load %arg19[%c0_48, %c0_49] : memref<128x128xf32, #tpu.memory_space<vmem>>, vector<128x128xf32>
    %c0_50 = arith.constant 0 : index
    %c0_51 = arith.constant 0 : index
    %56 = vector.load %arg20[%c0_50, %c0_51] : memref<128x128xf32, #tpu.memory_space<vmem>>, vector<128x128xf32>
    %cst_52 = arith.constant 0.000000e+00 : f32
    %57 = vector.broadcast %cst_52 : f32 to vector<32x128xf32>
    %58 = arith.maximumf %48, %57 : vector<32x128xf32>
    %cst_53 = arith.constant dense<0.000000e+00> : vector<16x128xf32>
    %59 = tpu.matmul %2, %58, %cst_53 {dimension_numbers = #tpu.dot_dimension_numbers<[1], [0], [0], [1], [0, 0, 1, 1], [], []>} : vector<16x32xf32>, vector<32x128xf32>, vector<16x128xf32> -> vector<16x128xf32>
    %cst_54 = arith.constant dense<0.000000e+00> : vector<16x128xf32>
    %60 = tpu.matmul %59, %55, %cst_54 {dimension_numbers = #tpu.dot_dimension_numbers<[1], [0], [0], [1], [0, 0, 1, 1], [], []>} : vector<16x128xf32>, vector<128x128xf32>, vector<16x128xf32> -> vector<16x128xf32>
    %61 = arith.addf %53, %60 : vector<16x128xf32>
    %cst_55 = arith.constant 0.000000e+00 : f32
    %62 = vector.broadcast %cst_55 : f32 to vector<16x128xf32>
    %63 = arith.maximumf %61, %62 : vector<16x128xf32>
    %cst_56 = arith.constant dense<0.000000e+00> : vector<16x256xf32>
    %64 = tpu.matmul %63, %54, %cst_56 {dimension_numbers = #tpu.dot_dimension_numbers<[1], [0], [0], [1], [0, 0, 1, 1], [], []>} : vector<16x128xf32>, vector<128x256xf32>, vector<16x256xf32> -> vector<16x256xf32>
    %65 = vector.extract_strided_slice %64 {offsets = [0, 0], sizes = [16, 128], strides = [1, 1]} : vector<16x256xf32> to vector<16x128xf32>
    %cst_57 = arith.constant dense<0.000000e+00> : vector<32x128xf32>
    %66 = tpu.matmul %0, %65, %cst_57 {dimension_numbers = #tpu.dot_dimension_numbers<[1], [0], [0], [1], [0, 0, 1, 1], [], []>} : vector<32x16xf32>, vector<16x128xf32>, vector<32x128xf32> -> vector<32x128xf32>
    %67 = arith.addf %48, %66 : vector<32x128xf32>
    %68 = vector.extract_strided_slice %64 {offsets = [0, 128], sizes = [16, 128], strides = [1, 1]} : vector<16x256xf32> to vector<16x128xf32>
    %cst_58 = arith.constant dense<0.000000e+00> : vector<32x128xf32>
    %69 = tpu.matmul %1, %68, %cst_58 {dimension_numbers = #tpu.dot_dimension_numbers<[1], [0], [0], [1], [0, 0, 1, 1], [], []>} : vector<32x16xf32>, vector<16x128xf32>, vector<32x128xf32> -> vector<32x128xf32>
    %70 = arith.addf %67, %69 : vector<32x128xf32>
    %cst_59 = arith.constant 0.000000e+00 : f32
    %71 = vector.broadcast %cst_59 : f32 to vector<32x128xf32>
    %72 = arith.maximumf %70, %71 : vector<32x128xf32>
    %cst_60 = arith.constant dense<0.000000e+00> : vector<16x128xf32>
    %73 = tpu.matmul %2, %72, %cst_60 {dimension_numbers = #tpu.dot_dimension_numbers<[1], [0], [0], [1], [0, 0, 1, 1], [], []>} : vector<16x32xf32>, vector<32x128xf32>, vector<16x128xf32> -> vector<16x128xf32>
    %cst_61 = arith.constant dense<0.000000e+00> : vector<16x128xf32>
    %74 = tpu.matmul %73, %55, %cst_61 {dimension_numbers = #tpu.dot_dimension_numbers<[1], [0], [0], [1], [0, 0, 1, 1], [], []>} : vector<16x128xf32>, vector<128x128xf32>, vector<16x128xf32> -> vector<16x128xf32>
    %75 = arith.addf %53, %74 : vector<16x128xf32>
    %cst_62 = arith.constant dense<0.000000e+00> : vector<16x128xf32>
    %76 = tpu.matmul %63, %56, %cst_62 {dimension_numbers = #tpu.dot_dimension_numbers<[1], [0], [0], [1], [0, 0, 1, 1], [], []>} : vector<16x128xf32>, vector<128x128xf32>, vector<16x128xf32> -> vector<16x128xf32>
    %77 = arith.addf %75, %76 : vector<16x128xf32>
    %78 = arith.addf %77, %63 : vector<16x128xf32>
    %cst_63 = arith.constant 0.000000e+00 : f32
    %79 = vector.broadcast %cst_63 : f32 to vector<16x128xf32>
    %80 = arith.maximumf %78, %79 : vector<16x128xf32>
    %cst_64 = arith.constant dense<0.000000e+00> : vector<16x256xf32>
    %81 = tpu.matmul %80, %54, %cst_64 {dimension_numbers = #tpu.dot_dimension_numbers<[1], [0], [0], [1], [0, 0, 1, 1], [], []>} : vector<16x128xf32>, vector<128x256xf32>, vector<16x256xf32> -> vector<16x256xf32>
    %82 = vector.extract_strided_slice %81 {offsets = [0, 0], sizes = [16, 128], strides = [1, 1]} : vector<16x256xf32> to vector<16x128xf32>
    %cst_65 = arith.constant dense<0.000000e+00> : vector<32x128xf32>
    %83 = tpu.matmul %0, %82, %cst_65 {dimension_numbers = #tpu.dot_dimension_numbers<[1], [0], [0], [1], [0, 0, 1, 1], [], []>} : vector<32x16xf32>, vector<16x128xf32>, vector<32x128xf32> -> vector<32x128xf32>
    %84 = arith.addf %48, %83 : vector<32x128xf32>
    %85 = vector.extract_strided_slice %81 {offsets = [0, 128], sizes = [16, 128], strides = [1, 1]} : vector<16x256xf32> to vector<16x128xf32>
    %cst_66 = arith.constant dense<0.000000e+00> : vector<32x128xf32>
    %86 = tpu.matmul %1, %85, %cst_66 {dimension_numbers = #tpu.dot_dimension_numbers<[1], [0], [0], [1], [0, 0, 1, 1], [], []>} : vector<32x16xf32>, vector<16x128xf32>, vector<32x128xf32> -> vector<32x128xf32>
    %87 = arith.addf %84, %86 : vector<32x128xf32>
    %cst_67 = arith.constant 0.000000e+00 : f32
    %88 = vector.broadcast %cst_67 : f32 to vector<32x128xf32>
    %89 = arith.maximumf %87, %88 : vector<32x128xf32>
    %cst_68 = arith.constant dense<0.000000e+00> : vector<16x128xf32>
    %90 = tpu.matmul %2, %89, %cst_68 {dimension_numbers = #tpu.dot_dimension_numbers<[1], [0], [0], [1], [0, 0, 1, 1], [], []>} : vector<16x32xf32>, vector<32x128xf32>, vector<16x128xf32> -> vector<16x128xf32>
    %cst_69 = arith.constant dense<0.000000e+00> : vector<16x128xf32>
    %91 = tpu.matmul %90, %55, %cst_69 {dimension_numbers = #tpu.dot_dimension_numbers<[1], [0], [0], [1], [0, 0, 1, 1], [], []>} : vector<16x128xf32>, vector<128x128xf32>, vector<16x128xf32> -> vector<16x128xf32>
    %92 = arith.addf %53, %91 : vector<16x128xf32>
    %cst_70 = arith.constant dense<0.000000e+00> : vector<16x128xf32>
    %93 = tpu.matmul %80, %56, %cst_70 {dimension_numbers = #tpu.dot_dimension_numbers<[1], [0], [0], [1], [0, 0, 1, 1], [], []>} : vector<16x128xf32>, vector<128x128xf32>, vector<16x128xf32> -> vector<16x128xf32>
    %94 = arith.addf %92, %93 : vector<16x128xf32>
    %95 = arith.addf %94, %80 : vector<16x128xf32>
    %cst_71 = arith.constant 0.000000e+00 : f32
    %96 = vector.broadcast %cst_71 : f32 to vector<16x128xf32>
    %97 = arith.maximumf %95, %96 : vector<16x128xf32>
    %cst_72 = arith.constant dense<0.000000e+00> : vector<16x256xf32>
    %98 = tpu.matmul %97, %54, %cst_72 {dimension_numbers = #tpu.dot_dimension_numbers<[1], [0], [0], [1], [0, 0, 1, 1], [], []>} : vector<16x128xf32>, vector<128x256xf32>, vector<16x256xf32> -> vector<16x256xf32>
    %99 = vector.extract_strided_slice %98 {offsets = [0, 0], sizes = [16, 128], strides = [1, 1]} : vector<16x256xf32> to vector<16x128xf32>
    %cst_73 = arith.constant dense<0.000000e+00> : vector<32x128xf32>
    %100 = tpu.matmul %0, %99, %cst_73 {dimension_numbers = #tpu.dot_dimension_numbers<[1], [0], [0], [1], [0, 0, 1, 1], [], []>} : vector<32x16xf32>, vector<16x128xf32>, vector<32x128xf32> -> vector<32x128xf32>
    %101 = arith.addf %48, %100 : vector<32x128xf32>
    %102 = vector.extract_strided_slice %98 {offsets = [0, 128], sizes = [16, 128], strides = [1, 1]} : vector<16x256xf32> to vector<16x128xf32>
    %cst_74 = arith.constant dense<0.000000e+00> : vector<32x128xf32>
    %103 = tpu.matmul %1, %102, %cst_74 {dimension_numbers = #tpu.dot_dimension_numbers<[1], [0], [0], [1], [0, 0, 1, 1], [], []>} : vector<32x16xf32>, vector<16x128xf32>, vector<32x128xf32> -> vector<32x128xf32>
    %104 = arith.addf %101, %103 : vector<32x128xf32>
    %cst_75 = arith.constant 0.000000e+00 : f32
    %105 = vector.broadcast %cst_75 : f32 to vector<32x128xf32>
    %106 = arith.maximumf %104, %105 : vector<32x128xf32>
    %cst_76 = arith.constant dense<0.000000e+00> : vector<16x128xf32>
    %107 = tpu.matmul %2, %106, %cst_76 {dimension_numbers = #tpu.dot_dimension_numbers<[1], [0], [0], [1], [0, 0, 1, 1], [], []>} : vector<16x32xf32>, vector<32x128xf32>, vector<16x128xf32> -> vector<16x128xf32>
    %cst_77 = arith.constant dense<0.000000e+00> : vector<16x128xf32>
    %108 = tpu.matmul %107, %55, %cst_77 {dimension_numbers = #tpu.dot_dimension_numbers<[1], [0], [0], [1], [0, 0, 1, 1], [], []>} : vector<16x128xf32>, vector<128x128xf32>, vector<16x128xf32> -> vector<16x128xf32>
    %109 = arith.addf %53, %108 : vector<16x128xf32>
    %cst_78 = arith.constant dense<0.000000e+00> : vector<16x128xf32>
    %110 = tpu.matmul %97, %56, %cst_78 {dimension_numbers = #tpu.dot_dimension_numbers<[1], [0], [0], [1], [0, 0, 1, 1], [], []>} : vector<16x128xf32>, vector<128x128xf32>, vector<16x128xf32> -> vector<16x128xf32>
    %111 = arith.addf %109, %110 : vector<16x128xf32>
    %112 = arith.addf %111, %97 : vector<16x128xf32>
    %cst_79 = arith.constant 0.000000e+00 : f32
    %113 = vector.broadcast %cst_79 : f32 to vector<16x128xf32>
    %114 = arith.maximumf %112, %113 : vector<16x128xf32>
    %cst_80 = arith.constant dense<0.000000e+00> : vector<16x256xf32>
    %115 = tpu.matmul %114, %54, %cst_80 {dimension_numbers = #tpu.dot_dimension_numbers<[1], [0], [0], [1], [0, 0, 1, 1], [], []>} : vector<16x128xf32>, vector<128x256xf32>, vector<16x256xf32> -> vector<16x256xf32>
    %116 = vector.extract_strided_slice %115 {offsets = [0, 0], sizes = [16, 128], strides = [1, 1]} : vector<16x256xf32> to vector<16x128xf32>
    %cst_81 = arith.constant dense<0.000000e+00> : vector<32x128xf32>
    %117 = tpu.matmul %0, %116, %cst_81 {dimension_numbers = #tpu.dot_dimension_numbers<[1], [0], [0], [1], [0, 0, 1, 1], [], []>} : vector<32x16xf32>, vector<16x128xf32>, vector<32x128xf32> -> vector<32x128xf32>
    %118 = arith.addf %48, %117 : vector<32x128xf32>
    %119 = vector.extract_strided_slice %115 {offsets = [0, 128], sizes = [16, 128], strides = [1, 1]} : vector<16x256xf32> to vector<16x128xf32>
    %cst_82 = arith.constant dense<0.000000e+00> : vector<32x128xf32>
    %120 = tpu.matmul %1, %119, %cst_82 {dimension_numbers = #tpu.dot_dimension_numbers<[1], [0], [0], [1], [0, 0, 1, 1], [], []>} : vector<32x16xf32>, vector<16x128xf32>, vector<32x128xf32> -> vector<32x128xf32>
    %121 = arith.addf %118, %120 : vector<32x128xf32>
    %cst_83 = arith.constant 0.000000e+00 : f32
    %122 = vector.broadcast %cst_83 : f32 to vector<32x128xf32>
    %123 = arith.maximumf %121, %122 : vector<32x128xf32>
    %cst_84 = arith.constant dense<0.000000e+00> : vector<16x128xf32>
    %124 = tpu.matmul %2, %123, %cst_84 {dimension_numbers = #tpu.dot_dimension_numbers<[1], [0], [0], [1], [0, 0, 1, 1], [], []>} : vector<16x32xf32>, vector<32x128xf32>, vector<16x128xf32> -> vector<16x128xf32>
    %cst_85 = arith.constant dense<0.000000e+00> : vector<16x128xf32>
    %125 = tpu.matmul %124, %55, %cst_85 {dimension_numbers = #tpu.dot_dimension_numbers<[1], [0], [0], [1], [0, 0, 1, 1], [], []>} : vector<16x128xf32>, vector<128x128xf32>, vector<16x128xf32> -> vector<16x128xf32>
    %126 = arith.addf %53, %125 : vector<16x128xf32>
    %cst_86 = arith.constant dense<0.000000e+00> : vector<16x128xf32>
    %127 = tpu.matmul %114, %56, %cst_86 {dimension_numbers = #tpu.dot_dimension_numbers<[1], [0], [0], [1], [0, 0, 1, 1], [], []>} : vector<16x128xf32>, vector<128x128xf32>, vector<16x128xf32> -> vector<16x128xf32>
    %128 = arith.addf %126, %127 : vector<16x128xf32>
    %129 = arith.addf %128, %114 : vector<16x128xf32>
    %cst_87 = arith.constant 0.000000e+00 : f32
    %130 = vector.broadcast %cst_87 : f32 to vector<16x128xf32>
    %131 = arith.maximumf %129, %130 : vector<16x128xf32>
    %c0_88 = arith.constant 0 : index
    %c0_89 = arith.constant 0 : index
    %132 = vector.load %arg22[%c0_88, %c0_89] : memref<128x128xf32, #tpu.memory_space<vmem>>, vector<128x128xf32>
    %c0_90 = arith.constant 0 : index
    %c0_91 = arith.constant 0 : index
    %133 = vector.load %arg23[%c0_90, %c0_91] : memref<1x128xf32, #tpu.memory_space<vmem>>, vector<1x128xf32>
    %cst_92 = arith.constant dense<0.000000e+00> : vector<16x128xf32>
    %134 = tpu.matmul %131, %132, %cst_92 {dimension_numbers = #tpu.dot_dimension_numbers<[1], [0], [0], [1], [0, 0, 1, 1], [], []>} : vector<16x128xf32>, vector<128x128xf32>, vector<16x128xf32> -> vector<16x128xf32>
    %135 = vector.broadcast %133 : vector<1x128xf32> to vector<16x128xf32>
    %136 = arith.addf %134, %135 : vector<16x128xf32>
    %cst_93 = arith.constant 0.000000e+00 : f32
    %137 = vector.broadcast %cst_93 : f32 to vector<16x128xf32>
    %138 = arith.maximumf %136, %137 : vector<16x128xf32>
    %c0_94 = arith.constant 0 : index
    %c0_95 = arith.constant 0 : index
    %139 = vector.load %arg24[%c0_94, %c0_95] : memref<128x128xf32, #tpu.memory_space<vmem>>, vector<128x128xf32>
    %c0_96 = arith.constant 0 : index
    %c0_97 = arith.constant 0 : index
    %140 = vector.load %arg25[%c0_96, %c0_97] : memref<1x128xf32, #tpu.memory_space<vmem>>, vector<1x128xf32>
    %cst_98 = arith.constant dense<0.000000e+00> : vector<16x128xf32>
    %141 = tpu.matmul %138, %139, %cst_98 {dimension_numbers = #tpu.dot_dimension_numbers<[1], [0], [0], [1], [0, 0, 1, 1], [], []>} : vector<16x128xf32>, vector<128x128xf32>, vector<16x128xf32> -> vector<16x128xf32>
    %142 = vector.broadcast %140 : vector<1x128xf32> to vector<16x128xf32>
    %143 = arith.addf %141, %142 : vector<16x128xf32>
    %c0_99 = arith.constant 0 : index
    %c0_100 = arith.constant 0 : index
    %144 = vector.load %arg26[%c0_99, %c0_100] : memref<16x128xf32, #tpu.memory_space<vmem>>, vector<16x128xf32>
    tpu.vector_store %arg26[%c0_99, %c0_100], %143 {strides = array<i32>} : memref<16x128xf32, #tpu.memory_space<vmem>>, vector<16x128xf32>,
    return
  }
}

</mosaic_0001>

<bundles_post_ra>
// kernel: propnet_forward.1
= control target key start
LH: loop header
LB: loop body
LE: loop exit
PB: predicated region body
PF: predicated region fallthrough
CT: control target
= control target key end

     0   :  { %s5722_s0 = inlined_call_operand.vmem [shape: f32[32,1], index: 0, kind: input, shape index: {}]   ;;  %s5723_s1 = inlined_call_operand.vmem [shape: f32[16,1], index: 1, kind: input, shape index: {}]   ;;  %s5724_s2 = inlined_call_operand.vmem [shape: f32[32,16], index: 2, kind: input, shape index: {}]   ;;  %s5725_s3 = inlined_call_operand.vmem [shape: f32[32,16], index: 3, kind: input, shape index: {}]   ;;  %s5726_s4 = inlined_call_operand.vmem [shape: f32[16,32], index: 4, kind: input, shape index: {}]   ;;  %s5727_s5 = inlined_call_operand.vmem [shape: f32[1,128], index: 5, kind: input, shape index: {}]   ;;  %s5728_s6 = inlined_call_operand.vmem [shape: f32[1,128], index: 6, kind: input, shape index: {}]   ;;  %s5729_s7 = inlined_call_operand.vmem [shape: f32[128,128], index: 7, kind: input, shape index: {}]   ;;  %s5730_s8 = inlined_call_operand.vmem [shape: f32[1,128], index: 8, kind: input, shape index: {}]   ;;  %s5731_s9 = inlined_call_operand.hbm [shape: f32[128,128], index: 9, kind: input, shape index: {}]   ;;  %s5732_s10 = inlined_call_operand.vmem [shape: f32[1,128], index: 10, kind: input, shape index: {}]   ;;  %s5733_s11 = inlined_call_operand.vmem [shape: f32[1,128], index: 11, kind: input, shape index: {}]   ;;  %s5734_s12 = inlined_call_operand.vmem [shape: f32[1,128], index: 12, kind: input, shape index: {}]   ;;  %s5735_s13 = inlined_call_operand.hbm [shape: f32[128,128], index: 13, kind: input, shape index: {}]   ;;  %s5736_s14 = inlined_call_operand.vmem [shape: f32[1,128], index: 14, kind: input, shape index: {}]   ;;  %s5737_s15 = inlined_call_operand.hbm [shape: f32[128,128], index: 15, kind: input, shape index: {}]   ;;  %s5738_s16 = inlined_call_operand.hbm [shape: f32[128,256], index: 16, kind: input, shape index: {}]   ;;  %s5739_s17 = inlined_call_operand.vmem [shape: f32[1,128], index: 17, kind: input, shape index: {}]   ;;  %s5740_s18 = inlined_call_operand.hbm [shape: f32[128,128], index: 18, kind: input, shape index: {}]   ;;  %s5741_s19 = inlined_call_operand.hbm [shape: f32[128,128], index: 19, kind: input, shape index: {}]   ;;  %s5742_s20 = inlined_call_operand.hbm [shape: f32[128,128], index: 20, kind: input, shape index: {}]   ;;  %s5743_s21 = inlined_call_operand.vmem [shape: f32[1,128], index: 21, kind: input, shape index: {}]   ;;  %s5744_s22 = inlined_call_operand.hbm [shape: f32[128,128], index: 22, kind: input, shape index: {}]   ;;  %s5745_s23 = inlined_call_operand.vmem [shape: f32[1,128], index: 23, kind: input, shape index: {}]   ;;  %s5746_s24 = inlined_call_operand.hbm [shape: f32[128,128], index: 24, kind: input, shape index: {}]   ;;  %s5747_s25 = inlined_call_operand.vmem [shape: f32[1,128], index: 25, kind: input, shape index: {}]   ;;  %s5748_s26 = inlined_call_operand.vmem [shape: f32[16,128], index: 26, kind: output, shape index: {}]  }
   0x1   :  { %5848 = sst [smem:[#allocation59_spill]] %s5722_s0 }
   0x2   :  { %5849 = sst [smem:[#allocation60_spill]] %s5723_s1 }
   0x3   :  { %5850 = sst [smem:[#allocation61_spill]] %s5724_s2 }
   0x4   :  { %5851 = sst [smem:[#allocation62_spill]] %s5725_s3 }
   0x5   :  { %5852 = sst [smem:[#allocation63_spill]] %s5726_s4 }
   0x6   :  { %5853 = sst [smem:[#allocation64_spill]] %s5727_s5 }
   0x7   :  { %5854 = sst [smem:[#allocation65_spill]] %s5728_s6 }
   0x8   :  { %5855 = sst [smem:[#allocation66_spill]] %s5729_s7 }
   0x9   :  { %5856 = sst [smem:[#allocation67_spill]] %s5730_s8 }
   0xa   :  { %5857 = sst [smem:[#allocation68_spill]] %s5731_s9 }
   0xb   :  { %5858 = sst [smem:[#allocation69_spill]] %s5732_s10 }
   0xc   :  { %31 = vsyncpa [#allocation3], 0 }
   0xd   :  { %32 = vsyncpa [#allocation5], 0 }
   0xe   :  { %33 = vsyncpa [#allocation8], 0 }
   0xf   :  { %34 = vsyncpa [#allocation11], 0 }
  0x10   :  { %35 = vsyncpa [#allocation14], 0  ;;  %s4662_s27 = smov [#allocation4]   ;;  %s4663_s7 = smov [#allocation7]  }
  0x11   :  { %s77_s3 = sshll.u32 %s4662_s27, 4  ;;  %s103_s28 = sshll.u32 %s4663_s7, 4  ;;  %s78_s3 = int_to_ptr.vmem [resolvable:$true] %s77_s3  ;;  %s104_s28 = int_to_ptr.vmem [resolvable:$true] %s103_s28 }
  0x12   :  { %s4480_s8 = scalar_lea.vmem %s78_s3, 2048  ;;  %p4485_p1 = scmp.lt.s32.totalorder %s78_s3, %s78_s3 }
  0x13   :  { %p4481_p0 = scmp.ne.s32.totalorder %s78_s3, %s4480_s8  ;;  %p4486_p2 = scmp.lt.s32.totalorder %s4480_s8, %s4480_s8 }
  0x15   :  { %p4487_p3 = por %p4486_p2, %p4485_p1 }
  0x17   :  { %p4488_p4 = pnand %p4487_p3, %p4481_p0 }
  0x19   :  { %4491 = shalt.err (!%p4488_p4)
}
  0x1a   :  { %s4664_s4 = smov 128   ;;  %s4665_s29 = smov 8  }
  0x1b   :  { %83 = dma.hbm_to_vmem [thread:$0]  %s5735_s13, 2048, %s78_s3, [#allocation5], %s4664_s4, %s4664_s4, %s4665_s29  }
  0x1c   :  { %s4500_s30 = scalar_lea.vmem %s104_s28, 4096  ;;  %p4505_p6 = scmp.lt.s32.totalorder %s104_s28, %s104_s28 }
  0x1d   :  { %p4501_p5 = scmp.ne.s32.totalorder %s104_s28, %s4500_s30  ;;  %p4506_p7 = scmp.lt.s32.totalorder %s4500_s30, %s4500_s30 }
  0x1f   :  { %p4507_p8 = por %p4506_p7, %p4505_p6 }
  0x21   :  { %p4508_p9 = pnand %p4507_p8, %p4501_p5 }
  0x23   :  { %4511 = shalt.err (!%p4508_p9)
}
  0x24   :  { %s4666_s2 = smov 256   ;;  %s4667_s5 = smov 16  }
  0x25   :  { %109 = dma.hbm_to_vmem [thread:$0]  %s5738_s16, 4096, %s104_s28, [#allocation8], %s4666_s2, %s4666_s2, %s4667_s5  }
  0x26   :  { %s4668_s1 = smov [#allocation10]   ;;  %s4669_s7 = smov [#allocation13]  }
  0x27   :  { %s129_s27 = sshll.u32 %s4668_s1, 4  ;;  %s155_s8 = sshll.u32 %s4669_s7, 4  ;;  %s130_s27 = int_to_ptr.vmem [resolvable:$true] %s129_s27  ;;  %s156_s8 = int_to_ptr.vmem [resolvable:$true] %s155_s8 }
  0x28   :  { %s4520_s13 = scalar_lea.vmem %s130_s27, 2048  ;;  %p4525_p11 = scmp.lt.s32.totalorder %s130_s27, %s130_s27 }
  0x29   :  { %p4521_p10 = scmp.ne.s32.totalorder %s130_s27, %s4520_s13  ;;  %p4526_p12 = scmp.lt.s32.totalorder %s4520_s13, %s4520_s13 }
  0x2b   :  { %p4527_p13 = por %p4526_p12, %p4525_p11 }
  0x2d   :  { %p4528_p0 = pnand %p4527_p13, %p4521_p10 }
  0x2f   :  { %4531 = shalt.err (!%p4528_p0)
}
  0x30   :  { %135 = dma.hbm_to_vmem [thread:$0]  %s5741_s19, 2048, %s130_s27, [#allocation11], %s4664_s4, %s4664_s4, %s4665_s29  }
  0x31   :  { %s4540_s16 = scalar_lea.vmem %s156_s8, 2048  ;;  %p4545_p2 = scmp.lt.s32.totalorder %s156_s8, %s156_s8 }
  0x32   :  { %p4541_p1 = scmp.ne.s32.totalorder %s156_s8, %s4540_s16  ;;  %p4546_p3 = scmp.lt.s32.totalorder %s4540_s16, %s4540_s16 }
  0x34   :  { %p4547_p4 = por %p4546_p3, %p4545_p2 }
  0x36   :  { %p4548_p5 = pnand %p4547_p4, %p4541_p1 }
  0x38   :  { %4551 = shalt.err (!%p4548_p5)
}
  0x39   :  { %161 = dma.hbm_to_vmem [thread:$0]  %s5744_s22, 2048, %s156_s8, [#allocation14], %s4664_s4, %s4664_s4, %s4665_s29  }
  0x3a   :  { %s4670_s30 = smov [#allocation2]   ;;  %s4671_s5 = smov [#allocation6]  }
  0x3b   :  { %s59_s2 = sshll.u32 %s4670_s30, 4  ;;  %s91_s10 = sshll.u32 %s4671_s5, 4  ;;  %s60_s2 = int_to_ptr.vmem [resolvable:$true] %s59_s2  ;;  %s92_s10 = int_to_ptr.vmem [resolvable:$true] %s91_s10 }
  0x3c   :  { %s4560_s19 = scalar_lea.vmem %s60_s2, 2048  ;;  %p4565_p7 = scmp.lt.s32.totalorder %s60_s2, %s60_s2 }
  0x3d   :  { %p4561_p6 = scmp.ne.s32.totalorder %s60_s2, %s4560_s19  ;;  %p4566_p8 = scmp.lt.s32.totalorder %s4560_s19, %s4560_s19 }
  0x3f   :  { %p4567_p9 = por %p4566_p8, %p4565_p7 }
  0x41   :  { %p4568_p10 = pnand %p4567_p9, %p4561_p6 }
  0x43   :  { %4571 = shalt.err (!%p4568_p10)
}
  0x44   :  { %s5859_s27 = sld [smem:[#allocation68_spill]]  ;;  %s4580_s22 = scalar_lea.vmem %s92_s10, 2048 }
  0x45   :  { %p4581_p11 = scmp.ne.s32.totalorder %s92_s10, %s4580_s22  ;;  %p4585_p12 = scmp.lt.s32.totalorder %s92_s10, %s92_s10 }
  0x46   :  { %p4586_p13 = scmp.lt.s32.totalorder %s4580_s22, %s4580_s22 }
  0x48   :  { %p4587_p0 = por %p4586_p13, %p4585_p12 }
  0x4a   :  { %65 = dma.hbm_to_vmem [thread:$0]  %s5859_s27, 2048, %s60_s2, [#allocation3], %s4664_s4, %s4664_s4, %s4665_s29  }
  0x4b   :  { %p4588_p1 = pnand %p4587_p0, %p4581_p11 }
  0x4d   :  { %4591 = shalt.err (!%p4588_p1)
}
  0x4e   :  { %97 = dma.hbm_to_vmem [thread:$0]  %s5737_s15, 2048, %s92_s10, [#allocation5], %s4664_s4, %s4664_s4, %s4665_s29  }
  0x4f   :  { %s4672_s13 = smov [#allocation9]   ;;  %s4673_s0 = smov [#allocation12]  }
  0x50   :  { %s117_s3 = sshll.u32 %s4672_s13, 4  ;;  %s141_s16 = sshll.u32 %s4673_s0, 4  ;;  %s118_s3 = int_to_ptr.vmem [resolvable:$true] %s117_s3  ;;  %s142_s16 = int_to_ptr.vmem [resolvable:$true] %s141_s16 }
  0x51   :  { %s4600_s28 = scalar_lea.vmem %s118_s3, 2048  ;;  %p4605_p3 = scmp.lt.s32.totalorder %s118_s3, %s118_s3 }
  0x52   :  { %p4601_p2 = scmp.ne.s32.totalorder %s118_s3, %s4600_s28  ;;  %p4606_p4 = scmp.lt.s32.totalorder %s4600_s28, %s4600_s28 }
  0x54   :  { %p4607_p5 = por %p4606_p4, %p4605_p3 }
  0x56   :  { %p4608_p6 = pnand %p4607_p5, %p4601_p2 }
  0x58   :  { %4611 = shalt.err (!%p4608_p6)
}
  0x59   :  { %123 = dma.hbm_to_vmem [thread:$0]  %s5740_s18, 2048, %s118_s3, [#allocation8], %s4664_s4, %s4664_s4, %s4665_s29  }
  0x5a   :  { %s4620_s15 = scalar_lea.vmem %s142_s16, 2048  ;;  %p4625_p8 = scmp.lt.s32.totalorder %s142_s16, %s142_s16 }
  0x5b   :  { %p4621_p7 = scmp.ne.s32.totalorder %s142_s16, %s4620_s15  ;;  %p4626_p9 = scmp.lt.s32.totalorder %s4620_s15, %s4620_s15 }
  0x5d   :  { %p4627_p10 = por %p4626_p9, %p4625_p8 }
  0x5f   :  { %p4628_p11 = pnand %p4627_p10, %p4621_p7 }
  0x61   :  { %4631 = shalt.err (!%p4628_p11)
}
  0x62   :  { %147 = dma.hbm_to_vmem [thread:$0]  %s5742_s20, 2048, %s142_s16, [#allocation11], %s4664_s4, %s4664_s4, %s4665_s29  }
  0x63   :  { %s4674_s10 = smov [#allocation15]  }
  0x64   :  { %s169_s19 = sshll.u32 %s4674_s10, 4  ;;  %s170_s19 = int_to_ptr.vmem [resolvable:$true] %s169_s19 }
  0x65   :  { %s4640_s6 = scalar_lea.vmem %s170_s19, 2048  ;;  %p4645_p13 = scmp.lt.s32.totalorder %s170_s19, %s170_s19 }
  0x66   :  { %p4641_p12 = scmp.ne.s32.totalorder %s170_s19, %s4640_s6  ;;  %p4646_p0 = scmp.lt.s32.totalorder %s4640_s6, %s4640_s6 }
  0x68   :  { %p4647_p1 = por %p4646_p0, %p4645_p13 }
  0x6a   :  { %p4648_p2 = pnand %p4647_p1, %p4641_p12 }
  0x6c   :  { %4651 = shalt.err (!%p4648_p2)
}
  0x6d   :  { %175 = dma.hbm_to_vmem [thread:$0]  %s5746_s24, 2048, %s170_s19, [#allocation14], %s4664_s4, %s4664_s4, %s4665_s29  }
  0x6e   :  { %4652 = dma.done.wait [#allocation3], 2048  }
  0x6f   :  { %4653 = vsyncadd [#allocation3], 4294965248 }
  0x70   :  { %4654 = dma.done.wait [#allocation5], 4096  }
  0x71   :  { %4655 = vsyncadd [#allocation5], 4294963200 }
  0x72   :  { %4656 = dma.done.wait [#allocation8], 6144  }
  0x73   :  { %4657 = vsyncadd [#allocation8], 4294961152 }
  0x74   :  { %4658 = dma.done.wait [#allocation11], 4096  }
  0x75   :  { %4659 = vsyncadd [#allocation11], 4294963200 }
  0x76   :  { %4660 = dma.done.wait [#allocation14], 4096  }
  0x77   :  { %4661 = vsyncadd [#allocation14], 4294963200  ;;  %v4675_v0 = vmov 0   ;;  %s5860_s22 = sld [smem:[#allocation59_spill]]  ;;  %v4929_v23 = vld [vmem:[#allocation4 + $0x78] sm:$0xff]  ;;  %v391_v25 = vld [vmem:[#allocation2 + $0x70] sm:$0xff] }
  0x78   :  { %4403 = vset.pattern.permute.xlu1 %v4675_v0  ;;  %4402 = vset.pattern.permute.xlu0 %v4675_v0  ;;  %s5861_s16 = sld [smem:[#allocation66_spill]]  ;;  %v392_v24 = vld [vmem:[#allocation2 + $0x78] sm:$0xff]  ;;  %v390_v26 = vld [vmem:[#allocation2 + $0x68] sm:$0xff]  ;;  %v389_v27 = vld [vmem:[#allocation2 + $0x60] sm:$0xff]  ;;  %vm895_vm0 = vcmask 261120   ;;  %vm1133_vm1 = vcmask 130048  }
  0x79   :  { %s5862_s10 = sld [smem:[#allocation60_spill]]  ;;  %3721 = vmatprep.subr.mxu1 %v392_v24  ;;  %v388_v28 = vld [vmem:[#allocation2 + $0x58] sm:$0xff]  ;;  %v387_v29 = vld [vmem:[#allocation2 + $0x50] sm:$0xff]  ;;  %v386_v30 = vld [vmem:[#allocation2 + $0x48] sm:$0xff] }
  0x7a   :  { %3722 = vmatpush3.msra.mxu1 %v392_v24  ;;  %v385_v31 = vld [vmem:[#allocation2 + $0x40] sm:$0xff]  ;;  %v384_v32 = vld [vmem:[#allocation2 + $0x38] sm:$0xff]  ;;  %v383_v33 = vld [vmem:[#allocation2 + $0x30] sm:$0xff]  ;;  %s5863_s7 = sld [smem:[#allocation64_spill]] }
  0x7b   :  { %3723 = vmatprep.subr.mxu1 %v391_v25  ;;  %v382_v34 = vld [vmem:[#allocation2 + $0x28] sm:$0xff]  ;;  %v381_v35 = vld [vmem:[#allocation2 + $0x20] sm:$0xff]  ;;  %s5864_s4 = sld [smem:[#allocation65_spill]]  ;;  %v535_v57 = vld [vmem:[#allocation4 + $0x70] sm:$0xff] }
  0x7c   :  { %3724 = vmatpush3.msra.mxu1 %v391_v25  ;;  %v3262_v49 = vld [vmem:[%s5733_s11] ss:$0 sm:$0xff]  ;;  %v534_v59 = vld [vmem:[#allocation4 + $0x68] sm:$0xff]  ;;  %v532_v63 = vld [vmem:[#allocation4 + $0x58] sm:$0xff]  ;;  %s5865_s28 = sld [smem:[#allocation67_spill]] }
  0x7d   :  { %v217_v1 = vld [vmem:[%s5860_s22 + $0x10] sm:$0xff]  ;;  %v215_v2 = vld [vmem:[%s5860_s22] sm:$0xff]  ;;  %v218_v3 = vld [vmem:[%s5860_s22 + $0x18] sm:$0xff]  ;;  %3725 = vmatprep.subr.mxu1 %v390_v26  ;;  %s5866_s2 = sld [smem:[#allocation69_spill]] }
  0x7e   :  { %233 = vperm.xlu1 %4403, %v217_v1   ;;  %223 = vperm.xlu0 %4402, %v215_v2   ;;  %v216_v4 = vld [vmem:[%s5860_s22 + $0x8] sm:$0xff]  ;;  %v280_v5 = vld [vmem:[%s5861_s16 + $0x78] sm:$0xff]  ;;  %v279_v6 = vld [vmem:[%s5861_s16 + $0x70] sm:$0xff]  ;;  %s5867_s19 = sld [smem:[#allocation63_spill]] }
  0x7f   :  { %3683 = vmatprep.subr.mxu0 %v280_v5  ;;  %v278_v7 = vld [vmem:[%s5861_s16 + $0x68] sm:$0xff]  ;;  %v489_v9 = vld [vmem:[%s5862_s10] sm:$0xff]  ;;  %v276_v11 = vld [vmem:[%s5861_s16 + $0x58] sm:$0xff]  ;;  %3726 = vmatpush3.msra.mxu1 %v390_v26  ;;  %s5899_s22 = sld [smem:[#allocation61_spill]] }
  0x80   :  { %3684 = vmatpush3.msra.mxu0 %v280_v5  ;;  %v490_v8 = vld [vmem:[%s5862_s10 + $0x8] sm:$0xff]  ;;  %v277_v10 = vld [vmem:[%s5861_s16 + $0x60] sm:$0xff]  ;;  %v275_v12 = vld [vmem:[%s5861_s16 + $0x50] sm:$0xff]  ;;  %3727 = vmatprep.subr.mxu1 %v389_v27  ;;  %s5904_s11 = sld [smem:[#allocation62_spill]] }
  0x81   :  { %3685 = vmatprep.subr.mxu0 %v279_v6  ;;  %v274_v13 = vld [vmem:[%s5861_s16 + $0x48] sm:$0xff]  ;;  %v273_v14 = vld [vmem:[%s5861_s16 + $0x40] sm:$0xff]  ;;  %v272_v15 = vld [vmem:[%s5861_s16 + $0x38] sm:$0xff]  ;;  %3728 = vmatpush3.msra.mxu1 %v389_v27 }
  0x82   :  { %238 = vperm.xlu1 %4403, %v218_v3   ;;  %228 = vperm.xlu0 %4402, %v216_v4   ;;  %v271_v16 = vld [vmem:[%s5861_s16 + $0x30] sm:$0xff]  ;;  %v270_v17 = vld [vmem:[%s5861_s16 + $0x28] sm:$0xff]  ;;  %v269_v18 = vld [vmem:[%s5861_s16 + $0x20] sm:$0xff] }
  0x83   :  { %3686 = vmatpush3.msra.mxu0 %v279_v6  ;;  %v268_v19 = vld [vmem:[%s5861_s16 + $0x18] sm:$0xff]  ;;  %v267_v20 = vld [vmem:[%s5861_s16 + $0x10] sm:$0xff]  ;;  %v266_v21 = vld [vmem:[%s5861_s16 + $0x8] sm:$0xff]  ;;  %3729 = vmatprep.subr.mxu1 %v388_v28 }
  0x84   :  { %3687 = vmatprep.subr.mxu0 %v278_v7  ;;  %v265_v22 = vld [vmem:[%s5861_s16] sm:$0xff]  ;;  %3730 = vmatpush3.msra.mxu1 %v388_v28  ;;  %v531_v0 = vld [vmem:[#allocation4 + $0x50] sm:$0xff]  ;;  %v530_v1 = vld [vmem:[#allocation4 + $0x48] sm:$0xff] }
  0x85   :  { %3688 = vmatpush3.msra.mxu0 %v278_v7  ;;  %3731 = vmatprep.subr.mxu1 %v387_v29  ;;  %v3258_v36 = vld [vmem:[%s5863_s7] ss:$0 sm:$0xff]  ;;  %v528_v3 = vld [vmem:[#allocation4 + $0x38] sm:$0xff]  ;;  %v527_v4 = vld [vmem:[#allocation4 + $0x30] sm:$0xff] }
  0x86   :  { %500 = vperm.xlu1 %4403, %v490_v8   ;;  %495 = vperm.xlu0 %4402, %v489_v9   ;;  %v3259_v37 = vld [vmem:[%s5864_s4] ss:$0 sm:$0xff]  ;;  %v526_v5 = vld [vmem:[#allocation4 + $0x28] sm:$0xff]  ;;  %v524_v8 = vld [vmem:[#allocation4 + $0x18] sm:$0xff] }
  0x87   :  { %3689 = vmatprep.subr.mxu0 %v277_v10  ;;  %3732 = vmatpush3.msra.mxu1 %v387_v29  ;;  %v3263_v52 = vld [vmem:[%s5734_s12] ss:$0 sm:$0xff]  ;;  %v739_v24 = vld [vmem:[#allocation9 + $0x50] sm:$0xff]  ;;  %v738_v25 = vld [vmem:[#allocation9 + $0x48] sm:$0xff] }
  0x88   :  { %3690 = vmatpush3.msra.mxu0 %v277_v10  ;;  %3733 = vmatprep.subr.mxu1 %v386_v30  ;;  %v533_v62 = vld [vmem:[#allocation4 + $0x60] sm:$0xff]  ;;  %v523_v10 = vld [vmem:[#allocation4 + $0x10] sm:$0xff]  ;;  %v736_v27 = vld [vmem:[#allocation9 + $0x38] sm:$0xff] }
  0x89   :  { %3691 = vmatprep.subr.mxu0 %v276_v11  ;;  %3734 = vmatpush3.msra.mxu1 %v386_v30  ;;  %v529_v2 = vld [vmem:[#allocation4 + $0x40] sm:$0xff]  ;;  %v735_v28 = vld [vmem:[#allocation9 + $0x30] sm:$0xff]  ;;  %v734_v29 = vld [vmem:[#allocation9 + $0x28] sm:$0xff] }
  0x8a   :  { %3692 = vmatpush3.msra.mxu0 %v276_v11  ;;  %3735 = vmatprep.subr.mxu1 %v385_v31  ;;  %v525_v7 = vld [vmem:[#allocation4 + $0x20] sm:$0xff]  ;;  %v522_v11 = vld [vmem:[#allocation4 + $0x8] sm:$0xff] }
  0x8b   :  { %3693 = vmatprep.subr.mxu0 %v275_v12  ;;  %3736 = vmatpush3.msra.mxu1 %v385_v31  ;;  %v737_v26 = vld [vmem:[#allocation9 + $0x40] sm:$0xff]  ;;  %v732_v31 = vld [vmem:[#allocation9 + $0x18] sm:$0xff] }
  0x8c   :  { %3694 = vmatpush3.msra.mxu0 %v275_v12  ;;  %3737 = vmatprep.subr.mxu1 %v384_v32  ;;  %v733_v30 = vld [vmem:[#allocation9 + $0x20] sm:$0xff] }
  0x8d   :  { %3695 = vmatprep.subr.mxu0 %v274_v13  ;;  %3738 = vmatpush3.msra.mxu1 %v384_v32  ;;  %v731_v32 = vld [vmem:[#allocation9 + $0x10] sm:$0xff] }
  0x8e   :  { %3696 = vmatpush3.msra.mxu0 %v274_v13  ;;  %3739 = vmatprep.subr.mxu1 %v383_v33  ;;  %v521_v13 = vld [vmem:[#allocation4] sm:$0xff] }
  0x8f   :  { %3697 = vmatprep.subr.mxu0 %v273_v14  ;;  %3740 = vmatpush3.msra.mxu1 %v383_v33  ;;  %v730_v33 = vld [vmem:[#allocation9 + $0x8] sm:$0xff] }
  0x90   :  { %3698 = vmatpush3.msra.mxu0 %v273_v14  ;;  %3741 = vmatprep.subr.mxu1 %v382_v34 }
  0x91   :  { %3699 = vmatprep.subr.mxu0 %v272_v15  ;;  %3742 = vmatpush3.msra.mxu1 %v382_v34  ;;  %v729_v34 = vld [vmem:[#allocation9] sm:$0xff] }
  0x92   :  { %3700 = vmatpush3.msra.mxu0 %v272_v15  ;;  %3743 = vmatprep.subr.mxu1 %v381_v35  ;;  %v380_v15 = vld [vmem:[#allocation2 + $0x18] sm:$0xff] }
  0x93   :  { %3701 = vmatprep.subr.mxu0 %v271_v16  ;;  %3744 = vmatpush3.msra.mxu1 %v381_v35  ;;  %v636_v35 = vld [vmem:[#allocation6 + $0x78] sm:$0xff] }
  0x94   :  { %3702 = vmatpush3.msra.mxu0 %v271_v16  ;;  %3745 = vmatprep.subr.mxu1 %v380_v15  ;;  %v379_v16 = vld [vmem:[#allocation2 + $0x10] sm:$0xff] }
  0x95   :  { %3703 = vmatprep.subr.mxu0 %v270_v17  ;;  %3746 = vmatpush3.msra.mxu1 %v380_v15 }
  0x96   :  { %3704 = vmatpush3.msra.mxu0 %v270_v17  ;;  %3747 = vmatprep.subr.mxu1 %v379_v16  ;;  %v378_v17 = vld [vmem:[#allocation2 + $0x8] sm:$0xff] }
  0x97   :  { %3705 = vmatprep.subr.mxu0 %v269_v18  ;;  %3748 = vmatpush3.msra.mxu1 %v379_v16 }
  0x98   :  { %3706 = vmatpush3.msra.mxu0 %v269_v18  ;;  %3749 = vmatprep.subr.mxu1 %v378_v17  ;;  %v377_v18 = vld [vmem:[#allocation2] sm:$0xff] }
  0x99   :  { %3707 = vmatprep.subr.mxu0 %v268_v19  ;;  %3750 = vmatpush3.msra.mxu1 %v378_v17 }
  0x9a   :  { %3708 = vmatpush3.msra.mxu0 %v268_v19  ;;  %3751 = vmatprep.subr.mxu1 %v377_v18  ;;  %v744_v19 = vld [vmem:[#allocation9 + $0x78] sm:$0xff] }
  0x9b   :  { %3709 = vmatprep.subr.mxu0 %v267_v20  ;;  %3752 = vmatpush3.msra.mxu1 %v377_v18 }
  0x9c   :  { %3710 = vmatpush3.msra.mxu0 %v267_v20  ;;  %v743_v20 = vld [vmem:[#allocation9 + $0x70] sm:$0xff]  ;;  %3794 = vmatprep.subr.mxu1 %v636_v35 }
  0x9d   :  { %3711 = vmatprep.subr.mxu0 %v266_v21 }
  0x9e   :  { %3712 = vmatpush3.msra.mxu0 %v266_v21  ;;  %v742_v21 = vld [vmem:[#allocation9 + $0x68] sm:$0xff] }
  0x9f   :  { %3713 = vmatprep.subr.mxu0 %v265_v22 }
  0xa0   :  { %3714 = vmatpush3.msra.mxu0 %v265_v22  ;;  %v741_v22 = vld [vmem:[#allocation9 + $0x60] sm:$0xff] }
  0xa1   :  { %3759 = vmatprep.subr.mxu0 %v4929_v23 }
  0xf9   :  { %v234_v38 = vpop.permute.xlu1 %233  ;;  %v224_v39 = vpop.permute.xlu0 %223 }
  0xfa   :  { %v249_v40 = vmul.f32 %v3258_v36, %v234_v38  ;;  %v247_v41 = vmul.f32 %v3258_v36, %v224_v39 }
  0xfc   :  { %v257_v42 = vadd.f32 %v3259_v37, %v247_v41  ;;  %v259_v43 = vadd.f32 %v3259_v37, %v249_v40 }
  0xfd   :  { %v239_v44 = vpop.permute.xlu1 %238  ;;  %v229_v45 = vpop.permute.xlu0 %228 }
  0xfe   :  { %v250_v46 = vmul.f32 %v3258_v36, %v239_v44  ;;  %v248_v47 = vmul.f32 %v3258_v36, %v229_v45  ;;  %v261_v48 = vmax.f32 %v257_v42, 0.0  ;;  %v263_v51 = vmax.f32 %v259_v43, 0.0  ;;  %v3260_v36 = vld [vmem:[%s5865_s28] ss:$0 sm:$0xff] }
 0x100   :  { %v258_v50 = vadd.f32 %v3259_v37, %v248_v47  ;;  %3715 = vmatprep.mubr.f32.mxu0 %v261_v48  ;;  %v260_v54 = vadd.f32 %v3259_v37, %v250_v46  ;;  %v635_v47 = vld [vmem:[#allocation6 + $0x70] sm:$0xff] }
 0x101   :  { %v496_v53 = vpop.permute.xlu0 %495  ;;  %v501_v6 = vpop.permute.xlu1 %500 }
 0x102   :  { %v262_v55 = vmax.f32 %v258_v50, 0.0  ;;  %v509_v56 = vmul.f32 %v3262_v49, %v496_v53  ;;  %v264_v60 = vmax.f32 %v260_v54, 0.0  ;;  %v510_v9 = vmul.f32 %v3262_v49, %v501_v6  ;;  %v634_v49 = vld [vmem:[#allocation6 + $0x68] sm:$0xff]  ;;  %v631_v53 = vld [vmem:[#allocation6 + $0x50] sm:$0xff]  ;;  %v621_v6 = vld [vmem:[#allocation6] sm:$0xff] }
 0x103   :  { %v630_v54 = vld [vmem:[#allocation6 + $0x48] sm:$0xff] }
 0x104   :  { %v517_v58 = vadd.f32 %v3263_v52, %v509_v56  ;;  %3716 = vmatmul.mubr.f32.vlgmr.msra.gmra.mxu0 %v262_v55  ;;  %v518_v12 = vadd.f32 %v3263_v52, %v510_v9  ;;  %v632_v52 = vld [vmem:[#allocation6 + $0x58] sm:$0xff]  ;;  %v629_v55 = vld [vmem:[#allocation6 + $0x40] sm:$0xff] }
 0x105   :  { %3760 = vmatpush3.msra.mxu0 %v4929_v23  ;;  %3718 = vmatprep.mubr.f32.mxu0 %v263_v51  ;;  %v740_v23 = vld [vmem:[#allocation9 + $0x58] sm:$0xff]  ;;  %v633_v51 = vld [vmem:[#allocation6 + $0x60] sm:$0xff] }
 0x106   :  { %v519_v61 = vmax.f32 %v517_v58, 0.0  ;;  %3761 = vmatprep.subr.mxu0 %v535_v57  ;;  %v520_v14 = vmax.f32 %v518_v12, 0.0  ;;  %v628_v56 = vld [vmem:[#allocation6 + $0x38] sm:$0xff]  ;;  %v626_v58 = vld [vmem:[#allocation6 + $0x28] sm:$0xff] }
 0x107   :  { %3762 = vmatpush3.msra.mxu0 %v535_v57  ;;  %v627_v57 = vld [vmem:[#allocation6 + $0x30] sm:$0xff] }
 0x108   :  { %3763 = vmatprep.subr.mxu0 %v534_v59  ;;  %3719 = vmatmul.mubr.f32.gmra.mxu0 %v264_v60  ;;  %v3264_v60 = vld [vmem:[%s5736_s14] ss:$0 sm:$0xff] }
 0x109   :  { %3764 = vmatpush3.msra.mxu0 %v534_v59  ;;  %3791 = vmatprep.mubr.f32.mxu0 %v519_v61  ;;  %v625_v59 = vld [vmem:[#allocation6 + $0x20] sm:$0xff] }
 0x10a   :  { %3765 = vmatprep.subr.mxu0 %v533_v62 }
 0x10b   :  { %3766 = vmatpush3.msra.mxu0 %v533_v62 }
 0x10c   :  { %3767 = vmatprep.subr.mxu0 %v532_v63 }
 0x10d   :  { %3768 = vmatpush3.msra.mxu0 %v532_v63 }
 0x10e   :  { %3769 = vmatprep.subr.mxu0 %v531_v0 }
 0x10f   :  { %3770 = vmatpush3.msra.mxu0 %v531_v0 }
 0x110   :  { %3771 = vmatprep.subr.mxu0 %v530_v1 }
 0x111   :  { %3772 = vmatpush3.msra.mxu0 %v530_v1 }
 0x112   :  { %3773 = vmatprep.subr.mxu0 %v529_v2 }
 0x113   :  { %3774 = vmatpush3.msra.mxu0 %v529_v2 }
 0x114   :  { %3775 = vmatprep.subr.mxu0 %v528_v3 }
 0x115   :  { %3776 = vmatpush3.msra.mxu0 %v528_v3  ;;  %v624_v3 = vld [vmem:[#allocation6 + $0x18] sm:$0xff] }
 0x116   :  { %3777 = vmatprep.subr.mxu0 %v527_v4 }
 0x117   :  { %3778 = vmatpush3.msra.mxu0 %v527_v4  ;;  %v623_v4 = vld [vmem:[#allocation6 + $0x10] sm:$0xff] }
 0x118   :  { %3779 = vmatprep.subr.mxu0 %v526_v5 }
 0x119   :  { %3780 = vmatpush3.msra.mxu0 %v526_v5  ;;  %v622_v5 = vld [vmem:[#allocation6 + $0x8] sm:$0xff] }
 0x11a   :  { %3781 = vmatprep.subr.mxu0 %v525_v7 }
 0x11b   :  { %3782 = vmatpush3.msra.mxu0 %v525_v7  ;;  %v3261_v7 = vld [vmem:[%s5866_s2] ss:$0 sm:$0xff] }
 0x11c   :  { %3783 = vmatprep.subr.mxu0 %v524_v8 }
 0x11d   :  { %3784 = vmatpush3.msra.mxu0 %v524_v8 }
 0x11e   :  { %3785 = vmatprep.subr.mxu0 %v523_v10 }
 0x11f   :  { %3786 = vmatpush3.msra.mxu0 %v523_v10 }
 0x120   :  { %3787 = vmatprep.subr.mxu0 %v522_v11 }
 0x121   :  { %3788 = vmatpush3.msra.mxu0 %v522_v11 }
 0x122   :  { %3789 = vmatprep.subr.mxu0 %v521_v13 }
 0x123   :  { %3790 = vmatpush3.msra.mxu0 %v521_v13 }
 0x124   :  { %3792 = vmatmul.mubr.f32.vlgmr.msra.gmra.mxu0 %v520_v14  ;;  %3832 = vmatprep.subr.mxu0 %v744_v19 }
 0x125   :  { %3833 = vmatpush3.msra.mxu0 %v744_v19 }
 0x126   :  { %3834 = vmatprep.subr.mxu0 %v743_v20 }
 0x127   :  { %3835 = vmatpush3.msra.mxu0 %v743_v20  ;;  %v4957_v20 = vld [vmem:[%s5867_s19] sm:$0xff] }
 0x128   :  { %3836 = vmatprep.subr.mxu0 %v742_v21  ;;  %5868 = vst [vmem:[#allocation21_spill] sm:$0xff] %v4957_v20 }
 0x129   :  { %3837 = vmatpush3.msra.mxu0 %v742_v21 }
 0x12a   :  { %3838 = vmatprep.subr.mxu0 %v741_v22 }
 0x12b   :  { %3839 = vmatpush3.msra.mxu0 %v741_v22 }
 0x12c   :  { %3840 = vmatprep.subr.mxu0 %v740_v23 }
 0x12d   :  { %3841 = vmatpush3.msra.mxu0 %v740_v23  ;;  %v3265_v23 = vld [vmem:[%s5739_s17] ss:$0 sm:$0xff] }
 0x12e   :  { %3842 = vmatprep.subr.mxu0 %v739_v24 }
 0x12f   :  { %3843 = vmatpush3.msra.mxu0 %v739_v24 }
 0x130   :  { %3844 = vmatprep.subr.mxu0 %v738_v25 }
 0x131   :  { %3845 = vmatpush3.msra.mxu0 %v738_v25 }
 0x132   :  { %3846 = vmatprep.subr.mxu0 %v737_v26 }
 0x133   :  { %3847 = vmatpush3.msra.mxu0 %v737_v26 }
 0x134   :  { %3848 = vmatprep.subr.mxu0 %v736_v27 }
 0x135   :  { %3849 = vmatpush3.msra.mxu0 %v736_v27 }
 0x136   :  { %3850 = vmatprep.subr.mxu0 %v735_v28 }
 0x137   :  { %3851 = vmatpush3.msra.mxu0 %v735_v28 }
 0x138   :  { %3852 = vmatprep.subr.mxu0 %v734_v29 }
 0x139   :  { %3853 = vmatpush3.msra.mxu0 %v734_v29 }
 0x13a   :  { %3854 = vmatprep.subr.mxu0 %v733_v30 }
 0x13b   :  { %3855 = vmatpush3.msra.mxu0 %v733_v30 }
 0x13c   :  { %3856 = vmatprep.subr.mxu0 %v732_v31 }
 0x13d   :  { %3857 = vmatpush3.msra.mxu0 %v732_v31 }
 0x13e   :  { %3858 = vmatprep.subr.mxu0 %v731_v32 }
 0x13f   :  { %3859 = vmatpush3.msra.mxu0 %v731_v32 }
 0x140   :  { %3860 = vmatprep.subr.mxu0 %v730_v33 }
 0x141   :  { %3861 = vmatpush3.msra.mxu0 %v730_v33 }
 0x142   :  { %3862 = vmatprep.subr.mxu0 %v729_v34 }
 0x143   :  { %3863 = vmatpush3.msra.mxu0 %v729_v34  ;;  %v4979_v34 = vld [vmem:[%s5867_s19 + $0x8] sm:$0xff] }
 0x1c4   :  { %v3717_v37 = vpop.f32.mrf.mxu0 }
 0x1c5   :  { %v360_v38 = vadd.f32 %v3717_v37, %v3260_v36  ;;  %v4989_v37 = vld [vmem:[#allocation10 + $0x68] sm:$0xff] }
 0x1c6   :  { %v354_v39 = vpop.f32.mrf.mxu0 }
 0x1c7   :  { %v355_v40 = vadd.f32 %v3260_v36, %v354_v39  ;;  %v374_v43 = vmax.f32 %v360_v38, 0.0  ;;  %v4993_v38 = vld [vmem:[#allocation10 + $0x60] sm:$0xff]  ;;  %v4997_v39 = vld [vmem:[#allocation10 + $0x58] sm:$0xff] }
 0x1c8   :  { %v3720_v41 = vpop.f32.mrf.mxu0 }
 0x1c9   :  { %v373_v42 = vmax.f32 %v355_v40, 0.0  ;;  %v370_v44 = vadd.f32 %v3720_v41, %v3260_v36  ;;  %v5001_v40 = vld [vmem:[#allocation10 + $0x50] sm:$0xff]  ;;  %v5005_v41 = vld [vmem:[#allocation10 + $0x48] sm:$0xff] }
 0x1ca   :  { %v364_v45 = vpop.f32.mrf.mxu0 }
 0x1cb   :  { %v365_v46 = vadd.f32 %v3260_v36, %v364_v45  ;;  %3753 = vmatprep.mubr.f32.mxu1 %v373_v42  ;;  %v376_v50 = vmax.f32 %v370_v44, 0.0  ;;  %v4983_v36 = vld [vmem:[#allocation10 + $0x70] sm:$0xff]  ;;  %v5009_v42 = vld [vmem:[#allocation10 + $0x40] sm:$0xff]  ;;  %v5021_v45 = vld [vmem:[#allocation10 + $0x28] sm:$0xff] }
 0x1cc   :  { %3754 = vmatmul.mubr.f32.vlgmr.msra.gmra.mxu1 %v374_v43  ;;  %v5013_v43 = vld [vmem:[#allocation10 + $0x38] sm:$0xff]  ;;  %v5017_v44 = vld [vmem:[#allocation10 + $0x30] sm:$0xff] }
 0x1cd   :  { %v375_v48 = vmax.f32 %v365_v46, 0.0  ;;  %3795 = vmatpush3.msra.mxu1 %v636_v35  ;;  %v4981_v35 = vld [vmem:[#allocation10 + $0x78] sm:$0xff]  ;;  %v5025_v46 = vld [vmem:[#allocation10 + $0x20] sm:$0xff] }
 0x1ce   :  { %3796 = vmatprep.subr.mxu1 %v635_v47 }
 0x1cf   :  { %3756 = vmatprep.mubr.f32.mxu1 %v375_v48  ;;  %3797 = vmatpush3.msra.mxu1 %v635_v47  ;;  %v5029_v47 = vld [vmem:[#allocation10 + $0x18] sm:$0xff]  ;;  %v5033_v48 = vld [vmem:[#allocation10 + $0x10] sm:$0xff] }
 0x1d0   :  { %3757 = vmatmul.mubr.f32.gmra.mxu1 %v376_v50  ;;  %3798 = vmatprep.subr.mxu1 %v634_v49  ;;  %v5043_v50 = vld [vmem:[#allocation10] sm:$0xff] }
 0x1d1   :  { %3799 = vmatpush3.msra.mxu1 %v634_v49  ;;  %v5039_v49 = vld [vmem:[#allocation10 + $0x8] sm:$0xff] }
 0x1d2   :  { %3800 = vmatprep.subr.mxu1 %v633_v51 }
 0x1d3   :  { %3801 = vmatpush3.msra.mxu1 %v633_v51  ;;  %v5047_v51 = vld [vmem:[#allocation7 + $0xf8] sm:$0xff] }
 0x1d4   :  { %3802 = vmatprep.subr.mxu1 %v632_v52  ;;  %1056 = vmatprep.subr.mxu0 %v5047_v51 }
 0x1d5   :  { %3803 = vmatpush3.msra.mxu1 %v632_v52  ;;  %v5049_v52 = vld [vmem:[#allocation7 + $0xf0] sm:$0xff] }
 0x1d6   :  { %3804 = vmatprep.subr.mxu1 %v631_v53 }
 0x1d7   :  { %3805 = vmatpush3.msra.mxu1 %v631_v53  ;;  %v5051_v53 = vld [vmem:[#allocation7 + $0xe8] sm:$0xff] }
 0x1d8   :  { %3806 = vmatprep.subr.mxu1 %v630_v54 }
 0x1d9   :  { %3807 = vmatpush3.msra.mxu1 %v630_v54  ;;  %v5054_v54 = vld [vmem:[#allocation7 + $0xe0] sm:$0xff] }
 0x1da   :  { %3808 = vmatprep.subr.mxu1 %v629_v55 }
 0x1db   :  { %3809 = vmatpush3.msra.mxu1 %v629_v55  ;;  %v5057_v55 = vld [vmem:[#allocation7 + $0xd8] sm:$0xff] }
 0x1dc   :  { %3810 = vmatprep.subr.mxu1 %v628_v56 }
 0x1dd   :  { %3811 = vmatpush3.msra.mxu1 %v628_v56  ;;  %v5060_v56 = vld [vmem:[#allocation7 + $0xd0] sm:$0xff] }
 0x1de   :  { %3812 = vmatprep.subr.mxu1 %v627_v57 }
 0x1df   :  { %3813 = vmatpush3.msra.mxu1 %v627_v57  ;;  %v5063_v57 = vld [vmem:[#allocation7 + $0xc8] sm:$0xff] }
 0x1e0   :  { %3814 = vmatprep.subr.mxu1 %v626_v58 }
 0x1e1   :  { %3815 = vmatpush3.msra.mxu1 %v626_v58  ;;  %v5066_v58 = vld [vmem:[#allocation7 + $0xc0] sm:$0xff] }
 0x1e2   :  { %3816 = vmatprep.subr.mxu1 %v625_v59 }
 0x1e3   :  { %3817 = vmatpush3.msra.mxu1 %v625_v59  ;;  %v5069_v59 = vld [vmem:[#allocation7 + $0xb8] sm:$0xff] }
 0x1e4   :  { %v3793_v61 = vpop.f32.mrf.mxu0  ;;  %3818 = vmatprep.subr.mxu1 %v624_v3 }
 0x1e5   :  { %v616_v62 = vadd.f32 %v3793_v61, %v3264_v60  ;;  %3819 = vmatpush3.msra.mxu1 %v624_v3  ;;  %v5075_v61 = vld [vmem:[#allocation7 + $0xa8] sm:$0xff]  ;;  %v5093_v3 = vld [vmem:[#allocation7 + $0x78] sm:$0xff] }
 0x1e6   :  { %v610_v63 = vpop.f32.mrf.mxu0  ;;  %3820 = vmatprep.subr.mxu1 %v623_v4 }
 0x1e7   :  { %v611_v0 = vadd.f32 %v3264_v60, %v610_v63  ;;  %v620_v2 = vmax.f32 %v616_v62, 0.0  ;;  %3821 = vmatpush3.msra.mxu1 %v623_v4  ;;  %v5072_v60 = vld [vmem:[#allocation7 + $0xb0] sm:$0xff]  ;;  %v5078_v62 = vld [vmem:[#allocation7 + $0xa0] sm:$0xff]  ;;  %v5081_v63 = vld [vmem:[#allocation7 + $0x98] sm:$0xff] }
 0x1e8   :  { %3822 = vmatprep.subr.mxu1 %v622_v5  ;;  %v5096_v4 = vld [vmem:[#allocation7 + $0x70] sm:$0xff] }
 0x1e9   :  { %v619_v1 = vmax.f32 %v611_v0, 0.0  ;;  %3823 = vmatpush3.msra.mxu1 %v622_v5  ;;  %v5084_v0 = vld [vmem:[#allocation7 + $0x90] sm:$0xff]  ;;  %v5099_v5 = vld [vmem:[#allocation7 + $0x68] sm:$0xff] }
 0x1ea   :  { %3824 = vmatprep.subr.mxu1 %v621_v6 }
 0x1eb   :  { %3864 = vmatprep.mubr.f32.mxu0 %v619_v1  ;;  %3825 = vmatpush3.msra.mxu1 %v621_v6  ;;  %v5087_v1 = vld [vmem:[#allocation7 + $0x88] sm:$0xff]  ;;  %v5102_v6 = vld [vmem:[#allocation7 + $0x60] sm:$0xff] }
 0x1ec   :  { %3865 = vmatmul.mubr.f32.vlgmr.msra.gmra.mxu0 %v620_v2  ;;  %v5090_v2 = vld [vmem:[#allocation7 + $0x80] sm:$0xff] }
 0x1ed   :  { %1057 = vmatpush1.msra.mxu0 %v5049_v52 }
 0x1ee   :  { %1058 = vmatprep.subr.mxu0 %v5051_v53 }
 0x1ef   :  { %1059 = vmatpush1.msra.mxu0 %v5054_v54 }
 0x1f0   :  { %1060 = vmatprep.subr.mxu0 %v5057_v55 }
 0x1f1   :  { %1061 = vmatpush1.msra.mxu0 %v5060_v56 }
 0x1f2   :  { %1062 = vmatprep.subr.mxu0 %v5063_v57 }
 0x1f3   :  { %1063 = vmatpush1.msra.mxu0 %v5066_v58 }
 0x1f4   :  { %1064 = vmatprep.subr.mxu0 %v5069_v59 }
 0x1f5   :  { %1065 = vmatpush1.msra.mxu0 %v5072_v60 }
 0x1f6   :  { %1066 = vmatprep.subr.mxu0 %v5075_v61 }
 0x1f7   :  { %1067 = vmatpush1.msra.mxu0 %v5078_v62 }
 0x1f8   :  { %1068 = vmatprep.subr.mxu0 %v5081_v63 }
 0x1f9   :  { %1069 = vmatpush1.msra.mxu0 %v5084_v0 }
 0x1fa   :  { %1070 = vmatprep.subr.mxu0 %v5087_v1 }
 0x1fb   :  { %1071 = vmatpush1.msra.mxu0 %v5090_v2 }
 0x1fc   :  { %1072 = vmatprep.subr.mxu0 %v5093_v3 }
 0x1fd   :  { %1073 = vmatpush1.msra.mxu0 %v5096_v4 }
 0x1fe   :  { %1074 = vmatprep.subr.mxu0 %v5099_v5 }
 0x1ff   :  { %1075 = vmatpush1.msra.mxu0 %v5102_v6 }
 0x28c   :  { %v3755_v8 = vpop.f32.mrf.mxu1 }
 0x28d   :  { %v472_v9 = vadd.f32 %v3755_v8, %v3261_v7  ;;  %v5108_v8 = vld [vmem:[#allocation7 + $0x50] sm:$0xff] }
 0x28e   :  { %v466_v10 = vpop.f32.mrf.mxu1 }
 0x28f   :  { %v467_v11 = vadd.f32 %v3261_v7, %v466_v10  ;;  %v486_v14 = vmax.f32 %v472_v9, 0.0  ;;  %v5111_v9 = vld [vmem:[#allocation7 + $0x48] sm:$0xff]  ;;  %v5114_v10 = vld [vmem:[#allocation7 + $0x40] sm:$0xff] }
 0x290   :  { %v3758_v12 = vpop.f32.mrf.mxu1  ;;  %5869 = vst [vmem:[#allocation22_spill] sm:$0xff] %v5114_v10 }
 0x291   :  { %v485_v13 = vmax.f32 %v467_v11, 0.0  ;;  %v482_v15 = vadd.f32 %v3758_v12, %v3261_v7  ;;  %v5117_v11 = vld [vmem:[#allocation7 + $0x38] sm:$0xff]  ;;  %v5120_v12 = vld [vmem:[#allocation7 + $0x30] sm:$0xff] }
 0x292   :  { %v476_v16 = vpop.f32.mrf.mxu1  ;;  %5870 = vst [vmem:[#allocation23_spill] sm:$0xff] %v5117_v11  ;;  %5871 = vst [vmem:[#allocation24_spill] sm:$0xff] %v5120_v12 }
 0x293   :  { %v477_v17 = vadd.f32 %v3261_v7, %v476_v16  ;;  %3826 = vmatprep.mubr.f32.mxu1 %v485_v13  ;;  %v488_v19 = vmax.f32 %v482_v15, 0.0  ;;  %v5105_v7 = vld [vmem:[#allocation7 + $0x58] sm:$0xff]  ;;  %v5125_v15 = vld [vmem:[#allocation7 + $0x28] sm:$0xff]  ;;  %v5128_v16 = vld [vmem:[#allocation7 + $0x20] sm:$0xff] }
 0x294   :  { %3827 = vmatmul.mubr.f32.vlgmr.msra.gmra.mxu1 %v486_v14  ;;  %1076 = vmatprep.subr.mxu0 %v5105_v7  ;;  %5872 = vst [vmem:[#allocation25_spill] sm:$0xff] %v5125_v15  ;;  %5873 = vst [vmem:[#allocation26_spill] sm:$0xff] %v5128_v16 }
 0x295   :  { %v487_v18 = vmax.f32 %v477_v17, 0.0  ;;  %1077 = vmatpush1.msra.mxu0 %v5108_v8  ;;  %v5131_v17 = vld [vmem:[#allocation7 + $0x18] sm:$0xff] }
 0x296   :  { %1078 = vmatprep.subr.mxu0 %v5111_v9  ;;  %5874 = vst [vmem:[#allocation27_spill] sm:$0xff] %v5131_v17 }
 0x297   :  { %3829 = vmatprep.mubr.f32.mxu1 %v487_v18  ;;  %1079 = vmatpush1.msra.mxu0 %v5114_v10  ;;  %v5134_v18 = vld [vmem:[#allocation7 + $0x10] sm:$0xff] }
 0x298   :  { %3830 = vmatmul.mubr.f32.gmra.mxu1 %v488_v19  ;;  %1080 = vmatprep.subr.mxu0 %v5117_v11  ;;  %5875 = vst [vmem:[#allocation28_spill] sm:$0xff] %v5134_v18  ;;  %v5137_v19 = vld [vmem:[#allocation7 + $0x8] sm:$0xff] }
 0x299   :  { %3875 = vmatprep.mubr.msk.f32.mxu1 %vm895_vm0, %v4957_v20  ;;  %1081 = vmatpush1.msra.mxu0 %v5120_v12  ;;  %5876 = vst [vmem:[#allocation29_spill] sm:$0xff] %v5137_v19 }
 0x29a   :  { %1082 = vmatprep.subr.mxu0 %v5125_v15 }
 0x29b   :  { %1083 = vmatpush1.msra.mxu0 %v5128_v16 }
 0x29c   :  { %1084 = vmatprep.subr.mxu0 %v5131_v17  ;;  %v5163_v17 = vld [vmem:[#allocation12 + $0x68] sm:$0xff] }
 0x29d   :  { %1085 = vmatpush1.msra.mxu0 %v5134_v18  ;;  %v5883_v18 = vmov 0.0   ;;  %5884 = vst [vmem:[#allocation36_spill] sm:$0xff] %v5163_v17 }
 0x29e   :  { %1086 = vmatprep.subr.mxu0 %v5137_v19 }
 0x354   :  { %v3828_v21 = vpop.f32.mrf.mxu1 }
 0x355   :  { %v4966_v27 = vadd.f32 %v3828_v21, %v3265_v23  ;;  %v5140_v21 = vld [vmem:[#allocation7] sm:$0xff] }
 0x356   :  { %v710_v22 = vpop.f32.mrf.mxu1  ;;  %5877 = vst [vmem:[#allocation30_spill] sm:$0xff] %v5140_v21  ;;  %1087 = vmatpush1.msra.mxu0 %v5140_v21 }
 0x357   :  { %v4971_v30 = vadd.f32 %v3265_v23, %v710_v22  ;;  %v892_v32 = vmax.f32 %v4966_v27, 0.0  ;;  %v5142_v22 = vld [vmem:[#allocation12 + $0x78] sm:$0xff] }
 0x358   :  { %v3831_v24 = vpop.f32.mrf.mxu1  ;;  %5878 = vst [vmem:[#allocation31_spill] sm:$0xff] %v5142_v22  ;;  %3979 = vmatprep.subr.mxu0 %v5142_v22 }
 0x359   :  { %v4964_v25 = vadd.f32 %v3831_v24, %v3265_v23  ;;  %v891_v33 = vmax.f32 %v4971_v30, 0.0  ;;  %v3866_v24 = vpop.f32.mrf.mxu0 }
 0x35a   :  { %v720_v26 = vpop.f32.mrf.mxu1 }
 0x35b   :  { %v4968_v28 = vadd.f32 %v3265_v23, %v720_v26  ;;  %v894_v29 = vmax.f32 %v4964_v25, 0.0  ;;  %v5759_v23 = vmov 0.0   ;;  %v818_v26 = vpop.f32.mrf.mxu0 }
 0x35c   :  { %1120 = vmatprep.mubr.f32.mxu0 %v5759_v23  ;;  %v5158_v23 = vld [vmem:[#allocation12 + $0x70] sm:$0xff] }
 0x35d   :  { %3867 = vmatprep.subr.mxu1 %v894_v29  ;;  %v893_v31 = vmax.f32 %v4968_v28, 0.0  ;;  %5882 = vst [vmem:[#allocation35_spill] sm:$0xff] %v5158_v23 }
 0x35e   :  { %3868 = vmatpush3.msra.mxu1 %v894_v29  ;;  %v3266_v29 = vld [vmem:[%s5743_s21] ss:$0 sm:$0xff] }
 0x35f   :  { %3869 = vmatprep.subr.mxu1 %v893_v31 }
 0x360   :  { %3870 = vmatpush3.msra.mxu1 %v893_v31 }
 0x361   :  { %3871 = vmatprep.subr.mxu1 %v892_v32 }
 0x362   :  { %3872 = vmatpush3.msra.mxu1 %v892_v32  ;;  %v5150_v32 = vadd.f32 %v3266_v29, %v818_v26 }
 0x363   :  { %3873 = vmatprep.subr.mxu1 %v891_v33 }
 0x364   :  { %3874 = vmatpush3.msra.mxu1 %v891_v33  ;;  %5879 = vst [vmem:[#allocation32_spill] sm:$0xff] %v5150_v32 }
 0x365   :  { %3876 = vmatmul.mubr.msk.f32.vlgmr.msra.gmra.mxu1 %vm895_vm0, %v4979_v34  ;;  %3878 = vmatprep.subr.mxu1 %v4981_v35 }
 0x366   :  { %3879 = vmatpush3.msra.mxu1 %v4981_v35 }
 0x367   :  { %3880 = vmatprep.subr.mxu1 %v4983_v36 }
 0x368   :  { %3881 = vmatpush3.msra.mxu1 %v4983_v36 }
 0x369   :  { %3882 = vmatprep.subr.mxu1 %v4989_v37 }
 0x36a   :  { %3883 = vmatpush3.msra.mxu1 %v4989_v37 }
 0x36b   :  { %3884 = vmatprep.subr.mxu1 %v4993_v38 }
 0x36c   :  { %3885 = vmatpush3.msra.mxu1 %v4993_v38 }
 0x36d   :  { %3886 = vmatprep.subr.mxu1 %v4997_v39 }
 0x36e   :  { %3887 = vmatpush3.msra.mxu1 %v4997_v39 }
 0x36f   :  { %3888 = vmatprep.subr.mxu1 %v5001_v40 }
 0x370   :  { %3889 = vmatpush3.msra.mxu1 %v5001_v40 }
 0x371   :  { %3890 = vmatprep.subr.mxu1 %v5005_v41 }
 0x372   :  { %3891 = vmatpush3.msra.mxu1 %v5005_v41 }
 0x373   :  { %3892 = vmatprep.subr.mxu1 %v5009_v42 }
 0x374   :  { %3893 = vmatpush3.msra.mxu1 %v5009_v42 }
 0x375   :  { %3894 = vmatprep.subr.mxu1 %v5013_v43 }
 0x376   :  { %3895 = vmatpush3.msra.mxu1 %v5013_v43 }
 0x377   :  { %3896 = vmatprep.subr.mxu1 %v5017_v44 }
 0x378   :  { %3897 = vmatpush3.msra.mxu1 %v5017_v44 }
 0x379   :  { %3898 = vmatprep.subr.mxu1 %v5021_v45 }
 0x37a   :  { %3899 = vmatpush3.msra.mxu1 %v5021_v45 }
 0x37b   :  { %3900 = vmatprep.subr.mxu1 %v5025_v46 }
 0x37c   :  { %3901 = vmatpush3.msra.mxu1 %v5025_v46 }
 0x37d   :  { %3902 = vmatprep.subr.mxu1 %v5029_v47 }
 0x37e   :  { %3903 = vmatpush3.msra.mxu1 %v5029_v47 }
 0x37f   :  { %3904 = vmatprep.subr.mxu1 %v5033_v48 }
 0x380   :  { %3905 = vmatpush3.msra.mxu1 %v5033_v48 }
 0x381   :  { %3906 = vmatprep.subr.mxu1 %v5039_v49 }
 0x382   :  { %3907 = vmatpush3.msra.mxu1 %v5039_v49 }
 0x383   :  { %3908 = vmatprep.subr.mxu1 %v5043_v50 }
 0x384   :  { %3909 = vmatpush3.msra.mxu1 %v5043_v50 }
 0x425   :  { %v3877_v13 = vpop.f32.mrf.mxu1 }
 0x427   :  { %v968_v14 = vpop.f32.mrf.mxu1 }
 0x428   :  { %3910 = vmatprep.mubr.f32.mxu1 %v968_v14 }
 0x429   :  { %3911 = vmatmul.mubr.f32.vlgmr.msra.gmra.mxu1 %v3877_v13  ;;  %v5152_v13 = vadd.f32 %v3866_v24, %v3266_v29  ;;  %v5169_v24 = vld [vmem:[#allocation12 + $0x60] sm:$0xff]  ;;  %v5175_v29 = vld [vmem:[#allocation12 + $0x58] sm:$0xff] }
 0x42a   :  { %5886 = vst [vmem:[#allocation38_spill] sm:$0xff] %v5169_v24  ;;  %5887 = vst [vmem:[#allocation39_spill] sm:$0xff] %v5175_v29 }
 0x42b   :  { %5880 = vst [vmem:[#allocation33_spill] sm:$0xff] %v5152_v13 }
 0x4e9   :  { %v3912_v31 = vpop.f32.mrf.mxu1 }
 0x4ea   :  { %v1053_v21 = vadd.f32 %v3912_v31, %v5152_v13  ;;  %v5183_v31 = vld [vmem:[#allocation12 + $0x48] sm:$0xff] }
 0x4eb   :  { %v1043_v33 = vpop.f32.mrf.mxu1  ;;  %5889 = vst [vmem:[#allocation41_spill] sm:$0xff] %v5183_v31 }
 0x4ec   :  { %v1052_v14 = vadd.f32 %v1043_v33, %v5150_v32  ;;  %v5165_v26 = vmax.f32 %v1053_v21, 0.0  ;;  %v5179_v21 = vld [vmem:[#allocation12 + $0x50] sm:$0xff]  ;;  %v5187_v33 = vld [vmem:[#allocation12 + $0x40] sm:$0xff] }
 0x4ed   :  { %5888 = vst [vmem:[#allocation40_spill] sm:$0xff] %v5179_v21  ;;  %5890 = vst [vmem:[#allocation42_spill] sm:$0xff] %v5187_v33 }
 0x4ee   :  { %v5156_v19 = vmax.f32 %v1052_v14, 0.0  ;;  %5885 = vst [vmem:[#allocation37_spill] sm:$0xff] %v5165_v26  ;;  %v5191_v14 = vld [vmem:[#allocation12 + $0x38] sm:$0xff] }
 0x4ef   :  { %5891 = vst [vmem:[#allocation43_spill] sm:$0xff] %v5191_v14 }
 0x4f0   :  { %5881 = vst [vmem:[#allocation34_spill] sm:$0xff] %v5156_v19  ;;  %1121 = vmatmul.mubr.f32.vlgmr.msra.gmra.mxu0 %v5156_v19 }
 0x4f1   :  { %3980 = vmatpush3.msra.mxu0 %v5142_v22  ;;  %1126 = vmatprep.mubr.f32.mxu0 %v5883_v18 }
 0x4f2   :  { %3981 = vmatprep.subr.mxu0 %v5158_v23 }
 0x4f3   :  { %3982 = vmatpush3.msra.mxu0 %v5158_v23 }
 0x4f4   :  { %3983 = vmatprep.subr.mxu0 %v5163_v17  ;;  %1127 = vmatmul.mubr.f32.gmra.mxu0 %v5165_v26 }
 0x4f5   :  { %3984 = vmatpush3.msra.mxu0 %v5163_v17  ;;  %4011 = vmatprep.mubr.f32.mxu0 %v5156_v19 }
 0x4f6   :  { %3985 = vmatprep.subr.mxu0 %v5169_v24 }
 0x4f7   :  { %3986 = vmatpush3.msra.mxu0 %v5169_v24  ;;  %v5195_v24 = vld [vmem:[#allocation12 + $0x30] sm:$0xff] }
 0x4f8   :  { %3987 = vmatprep.subr.mxu0 %v5175_v29  ;;  %5892 = vst [vmem:[#allocation44_spill] sm:$0xff] %v5195_v24 }
 0x4f9   :  { %3988 = vmatpush3.msra.mxu0 %v5175_v29  ;;  %v5199_v29 = vld [vmem:[#allocation12 + $0x28] sm:$0xff] }
 0x4fa   :  { %3989 = vmatprep.subr.mxu0 %v5179_v21  ;;  %5893 = vst [vmem:[#allocation45_spill] sm:$0xff] %v5199_v29 }
 0x4fb   :  { %3990 = vmatpush3.msra.mxu0 %v5179_v21  ;;  %v5203_v21 = vld [vmem:[#allocation12 + $0x20] sm:$0xff] }
 0x4fc   :  { %3991 = vmatprep.subr.mxu0 %v5183_v31  ;;  %5894 = vst [vmem:[#allocation46_spill] sm:$0xff] %v5203_v21 }
 0x4fd   :  { %3992 = vmatpush3.msra.mxu0 %v5183_v31  ;;  %v5207_v31 = vld [vmem:[#allocation12 + $0x18] sm:$0xff] }
 0x4fe   :  { %3993 = vmatprep.subr.mxu0 %v5187_v33  ;;  %5895 = vst [vmem:[#allocation47_spill] sm:$0xff] %v5207_v31 }
 0x4ff   :  { %3994 = vmatpush3.msra.mxu0 %v5187_v33  ;;  %v5211_v33 = vld [vmem:[#allocation12 + $0x10] sm:$0xff] }
 0x500   :  { %3995 = vmatprep.subr.mxu0 %v5191_v14  ;;  %5896 = vst [vmem:[#allocation48_spill] sm:$0xff] %v5211_v33 }
 0x501   :  { %3996 = vmatpush3.msra.mxu0 %v5191_v14  ;;  %v5215_v14 = vld [vmem:[#allocation12 + $0x8] sm:$0xff] }
 0x502   :  { %3997 = vmatprep.subr.mxu0 %v5195_v24  ;;  %5897 = vst [vmem:[#allocation49_spill] sm:$0xff] %v5215_v14 }
 0x503   :  { %3998 = vmatpush3.msra.mxu0 %v5195_v24  ;;  %v5219_v24 = vld [vmem:[#allocation12] sm:$0xff] }
 0x504   :  { %3999 = vmatprep.subr.mxu0 %v5199_v29  ;;  %5898 = vst [vmem:[#allocation50_spill] sm:$0xff] %v5219_v24 }
 0x505   :  { %4000 = vmatpush3.msra.mxu0 %v5199_v29  ;;  %v5243_v29 = vld [vmem:[%s5899_s22 + $0x10] sm:$0xff] }
 0x506   :  { %4001 = vmatprep.subr.mxu0 %v5203_v21  ;;  %5902 = vst [vmem:[#allocation53_spill] sm:$0xff] %v5243_v29 }
 0x507   :  { %4002 = vmatpush3.msra.mxu0 %v5203_v21 }
 0x508   :  { %4003 = vmatprep.subr.mxu0 %v5207_v31 }
 0x509   :  { %4004 = vmatpush3.msra.mxu0 %v5207_v31  ;;  %v5229_v31 = vld [vmem:[%s5899_s22] sm:$0xff] }
 0x50a   :  { %4005 = vmatprep.subr.mxu0 %v5211_v33  ;;  %5900 = vst [vmem:[#allocation51_spill] sm:$0xff] %v5229_v31  ;;  %3917 = vmatprep.mubr.msk.f32.mxu1 %vm1133_vm1, %v5229_v31 }
 0x50b   :  { %4006 = vmatpush3.msra.mxu0 %v5211_v33 }
 0x50c   :  { %4007 = vmatprep.subr.mxu0 %v5215_v14 }
 0x50d   :  { %4008 = vmatpush3.msra.mxu0 %v5215_v14 }
 0x50e   :  { %4009 = vmatprep.subr.mxu0 %v5219_v24 }
 0x50f   :  { %4010 = vmatpush3.msra.mxu0 %v5219_v24  ;;  %v5238_v24 = vld [vmem:[%s5899_s22 + $0x8] sm:$0xff] }
 0x510   :  { %4012 = vmatmul.mubr.f32.vlgmr.msra.gmra.mxu0 %v5165_v26  ;;  %5901 = vst [vmem:[#allocation52_spill] sm:$0xff] %v5238_v24 }
 0x511   :  { %4018 = vmatprep.mubr.msk.f32.mxu0 %vm1133_vm1, %v5229_v31  ;;  %v5257_v31 = vld [vmem:[%s5904_s11] sm:$0xff] }
 0x512   :  { %5905 = vst [vmem:[#allocation55_spill] sm:$0xff] %v5257_v31 }
 0x5b0   :  { %v1122_v33 = vpop.f32.mrf.mxu0 }
 0x5b2   :  { %v1124_v14 = vpop.f32.mrf.mxu0 }
 0x5b4   :  { %v1128_v21 = vpop.f32.mrf.mxu0 }
 0x5b5   :  { %3913 = vmatprep.subr.mxu1 %v1128_v21 }
 0x5b6   :  { %3914 = vmatpush3.msra.mxu1 %v1128_v21  ;;  %v1130_v17 = vpop.f32.mrf.mxu0  ;;  %v5252_v21 = vld [vmem:[%s5899_s22 + $0x18] sm:$0xff] }
 0x5b7   :  { %3915 = vmatprep.subr.mxu1 %v1122_v33  ;;  %5903 = vst [vmem:[#allocation54_spill] sm:$0xff] %v5252_v21 }
 0x5b8   :  { %3916 = vmatpush3.msra.mxu1 %v1122_v33  ;;  %v5271_v33 = vld [vmem:[%s5904_s11 + $0x10] sm:$0xff] }
 0x5b9   :  { %3918 = vmatmul.mubr.msk.f32.vlgmr.msra.gmra.mxu1 %vm1133_vm1, %v5238_v24  ;;  %3923 = vmatprep.subr.mxu1 %v1130_v17  ;;  %5907 = vst [vmem:[#allocation57_spill] sm:$0xff] %v5271_v33 }
 0x5ba   :  { %3924 = vmatpush3.msra.mxu1 %v1130_v17  ;;  %3920 = vmatprep.mubr.msk.f32.mxu1 %vm1133_vm1, %v5243_v29  ;;  %v5266_v17 = vld [vmem:[%s5904_s11 + $0x8] sm:$0xff] }
 0x5bb   :  { %3925 = vmatprep.subr.mxu1 %v1124_v14  ;;  %5906 = vst [vmem:[#allocation56_spill] sm:$0xff] %v5266_v17 }
 0x5bc   :  { %3926 = vmatpush3.msra.mxu1 %v1124_v14  ;;  %v5280_v14 = vld [vmem:[%s5904_s11 + $0x18] sm:$0xff] }
 0x5bd   :  { %3921 = vmatmul.mubr.msk.f32.gmra.mxu1 %vm1133_vm1, %v5252_v21  ;;  %5908 = vst [vmem:[#allocation58_spill] sm:$0xff] %v5280_v14 }
 0x5be   :  { %3927 = vmatprep.mubr.msk.f32.mxu1 %vm1133_vm1, %v5257_v31 }
 0x5c1   :  { %3928 = vmatmul.mubr.msk.f32.vlgmr.msra.gmra.mxu1 %vm1133_vm1, %v5266_v17 }
 0x5c2   :  { %3930 = vmatprep.mubr.msk.f32.mxu1 %vm1133_vm1, %v5271_v33 }
 0x5c5   :  { %3931 = vmatmul.mubr.msk.f32.gmra.mxu1 %vm1133_vm1, %v5280_v14 }
 0x5c6   :  { %3941 = vmatprep.mubr.msk.f32.mxu1 %vm895_vm0, %v4957_v20 }
 0x679   :  { %v3919_v31 = vpop.f32.mrf.mxu1 }
 0x67a   :  { %v1232_v19 = vadd.f32 %v3919_v31, %v4966_v27 }
 0x67b   :  { %v1212_v21 = vpop.f32.mrf.mxu1 }
 0x67c   :  { %v1231_v14 = vadd.f32 %v1212_v21, %v4971_v30  ;;  %v5919_v21 = vld [vmem:[#allocation33_spill] sm:$0xff] }
 0x67d   :  { %v3922_v29 = vpop.f32.mrf.mxu1 }
 0x67e   :  { %v1234_v26 = vadd.f32 %v3922_v29, %v4964_v25 }
 0x67f   :  { %v1222_v24 = vpop.f32.mrf.mxu1 }
 0x680   :  { %v1233_v32 = vadd.f32 %v1222_v24, %v4968_v28  ;;  %v4013_v24 = vpop.f32.mrf.mxu0 }
 0x681   :  { %v3929_v23 = vpop.f32.mrf.mxu1 }
 0x682   :  { %v1333_v16 = vadd.f32 %v3929_v23, %v1232_v19  ;;  %v5913_v19 = vld [vmem:[#allocation26_spill] sm:$0xff]  ;;  %v5915_v23 = vld [vmem:[#allocation28_spill] sm:$0xff] }
 0x683   :  { %v1313_v17 = vpop.f32.mrf.mxu1 }
 0x684   :  { %v1332_v12 = vadd.f32 %v1313_v17, %v1231_v14  ;;  %v1337_v10 = vmax.f32 %v1333_v16, 0.0  ;;  %v5912_v16 = vld [vmem:[#allocation25_spill] sm:$0xff]  ;;  %v5920_v14 = vld [vmem:[#allocation32_spill] sm:$0xff] }
 0x685   :  { %v3932_v33 = vpop.f32.mrf.mxu1 }
 0x686   :  { %v1335_v13 = vadd.f32 %v3932_v33, %v1234_v26  ;;  %v1336_v29 = vmax.f32 %v1332_v12, 0.0  ;;  %v5910_v12 = vld [vmem:[#allocation23_spill] sm:$0xff] }
 0x687   :  { %v1323_v22 = vpop.f32.mrf.mxu1  ;;  %v5918_v26 = vld [vmem:[#allocation31_spill] sm:$0xff] }
 0x688   :  { %v1339_v15 = vmax.f32 %v1335_v13, 0.0  ;;  %v1334_v20 = vadd.f32 %v1323_v22, %v1233_v32  ;;  %v5914_v22 = vld [vmem:[#allocation27_spill] sm:$0xff]  ;;  %v5916_v32 = vld [vmem:[#allocation29_spill] sm:$0xff]  ;;  %v5917_v13 = vld [vmem:[#allocation30_spill] sm:$0xff] }
 0x68a   :  { %v1338_v11 = vmax.f32 %v1334_v20, 0.0  ;;  %3933 = vmatprep.subr.mxu1 %v1339_v15 }
 0x68b   :  { %3934 = vmatpush3.msra.mxu1 %v1339_v15  ;;  %v5911_v15 = vld [vmem:[#allocation24_spill] sm:$0xff] }
 0x68c   :  { %3935 = vmatprep.subr.mxu1 %v1338_v11 }
 0x68d   :  { %3936 = vmatpush3.msra.mxu1 %v1338_v11  ;;  %v5909_v11 = vld [vmem:[#allocation22_spill] sm:$0xff] }
 0x68e   :  { %3937 = vmatprep.subr.mxu1 %v1337_v10 }
 0x68f   :  { %3938 = vmatpush3.msra.mxu1 %v1337_v10 }
 0x690   :  { %3939 = vmatprep.subr.mxu1 %v1336_v29 }
 0x691   :  { %3940 = vmatpush3.msra.mxu1 %v1336_v29 }
 0x692   :  { %3942 = vmatmul.mubr.msk.f32.vlgmr.msra.gmra.mxu1 %vm895_vm0, %v4979_v34  ;;  %3944 = vmatprep.subr.mxu1 %v4981_v35 }
 0x693   :  { %3945 = vmatpush3.msra.mxu1 %v4981_v35 }
 0x694   :  { %3946 = vmatprep.subr.mxu1 %v4983_v36 }
 0x695   :  { %3947 = vmatpush3.msra.mxu1 %v4983_v36 }
 0x696   :  { %3948 = vmatprep.subr.mxu1 %v4989_v37 }
 0x697   :  { %3949 = vmatpush3.msra.mxu1 %v4989_v37 }
 0x698   :  { %3950 = vmatprep.subr.mxu1 %v4993_v38 }
 0x699   :  { %3951 = vmatpush3.msra.mxu1 %v4993_v38 }
 0x69a   :  { %3952 = vmatprep.subr.mxu1 %v4997_v39 }
 0x69b   :  { %3953 = vmatpush3.msra.mxu1 %v4997_v39 }
 0x69c   :  { %3954 = vmatprep.subr.mxu1 %v5001_v40 }
 0x69d   :  { %3955 = vmatpush3.msra.mxu1 %v5001_v40 }
 0x69e   :  { %3956 = vmatprep.subr.mxu1 %v5005_v41 }
 0x69f   :  { %3957 = vmatpush3.msra.mxu1 %v5005_v41 }
 0x6a0   :  { %3958 = vmatprep.subr.mxu1 %v5009_v42 }
 0x6a1   :  { %3959 = vmatpush3.msra.mxu1 %v5009_v42 }
 0x6a2   :  { %3960 = vmatprep.subr.mxu1 %v5013_v43 }
 0x6a3   :  { %3961 = vmatpush3.msra.mxu1 %v5013_v43 }
 0x6a4   :  { %3962 = vmatprep.subr.mxu1 %v5017_v44 }
 0x6a5   :  { %3963 = vmatpush3.msra.mxu1 %v5017_v44 }
 0x6a6   :  { %3964 = vmatprep.subr.mxu1 %v5021_v45 }
 0x6a7   :  { %3965 = vmatpush3.msra.mxu1 %v5021_v45 }
 0x6a8   :  { %3966 = vmatprep.subr.mxu1 %v5025_v46 }
 0x6a9   :  { %3967 = vmatpush3.msra.mxu1 %v5025_v46 }
 0x6aa   :  { %3968 = vmatprep.subr.mxu1 %v5029_v47 }
 0x6ab   :  { %3969 = vmatpush3.msra.mxu1 %v5029_v47 }
 0x6ac   :  { %3970 = vmatprep.subr.mxu1 %v5033_v48 }
 0x6ad   :  { %3971 = vmatpush3.msra.mxu1 %v5033_v48 }
 0x6ae   :  { %3972 = vmatprep.subr.mxu1 %v5039_v49 }
 0x6af   :  { %3973 = vmatpush3.msra.mxu1 %v5039_v49 }
 0x6b0   :  { %3974 = vmatprep.subr.mxu1 %v5043_v50 }
 0x6b1   :  { %3975 = vmatpush3.msra.mxu1 %v5043_v50 }
 0x6b2   :  { %1573 = vmatprep.subr.mxu1 %v5047_v51 }
 0x752   :  { %v3943_v20 = vpop.f32.mrf.mxu1 }
 0x754   :  { %v1406_v10 = vpop.f32.mrf.mxu1 }
 0x755   :  { %3976 = vmatprep.mubr.f32.mxu1 %v1406_v10 }
 0x756   :  { %3977 = vmatmul.mubr.f32.vlgmr.msra.gmra.mxu1 %v3943_v20  ;;  %v1558_v20 = vpop.f32.mrf.mxu0 }
 0x757   :  { %1574 = vmatpush1.msra.mxu1 %v5049_v52  ;;  %1637 = vmatprep.mubr.f32.mxu1 %v5883_v18 }
 0x758   :  { %1575 = vmatprep.subr.mxu1 %v5051_v53 }
 0x759   :  { %1576 = vmatpush1.msra.mxu1 %v5054_v54 }
 0x75a   :  { %1577 = vmatprep.subr.mxu1 %v5057_v55 }
 0x75b   :  { %1578 = vmatpush1.msra.mxu1 %v5060_v56 }
 0x75c   :  { %1579 = vmatprep.subr.mxu1 %v5063_v57 }
 0x75d   :  { %1580 = vmatpush1.msra.mxu1 %v5066_v58 }
 0x75e   :  { %1581 = vmatprep.subr.mxu1 %v5069_v59 }
 0x75f   :  { %1582 = vmatpush1.msra.mxu1 %v5072_v60 }
 0x760   :  { %1583 = vmatprep.subr.mxu1 %v5075_v61 }
 0x761   :  { %1584 = vmatpush1.msra.mxu1 %v5078_v62 }
 0x762   :  { %1585 = vmatprep.subr.mxu1 %v5081_v63 }
 0x763   :  { %1586 = vmatpush1.msra.mxu1 %v5084_v0 }
 0x764   :  { %1587 = vmatprep.subr.mxu1 %v5087_v1 }
 0x765   :  { %1588 = vmatpush1.msra.mxu1 %v5090_v2 }
 0x766   :  { %1589 = vmatprep.subr.mxu1 %v5093_v3 }
 0x767   :  { %1590 = vmatpush1.msra.mxu1 %v5096_v4 }
 0x768   :  { %1591 = vmatprep.subr.mxu1 %v5099_v5 }
 0x769   :  { %1592 = vmatpush1.msra.mxu1 %v5102_v6 }
 0x76a   :  { %1593 = vmatprep.subr.mxu1 %v5105_v7 }
 0x76b   :  { %1594 = vmatpush1.msra.mxu1 %v5108_v8 }
 0x76c   :  { %1595 = vmatprep.subr.mxu1 %v5111_v9 }
 0x76d   :  { %1596 = vmatpush1.msra.mxu1 %v5909_v11 }
 0x76e   :  { %1597 = vmatprep.subr.mxu1 %v5910_v12 }
 0x76f   :  { %1598 = vmatpush1.msra.mxu1 %v5911_v15 }
 0x770   :  { %1599 = vmatprep.subr.mxu1 %v5912_v16  ;;  %v5921_v16 = vld [vmem:[#allocation34_spill] sm:$0xff] }
 0x771   :  { %1600 = vmatpush1.msra.mxu1 %v5913_v19 }
 0x772   :  { %1601 = vmatprep.subr.mxu1 %v5914_v22 }
 0x773   :  { %1602 = vmatpush1.msra.mxu1 %v5915_v23  ;;  %v5923_v23 = vld [vmem:[#allocation37_spill] sm:$0xff] }
 0x774   :  { %1603 = vmatprep.subr.mxu1 %v5916_v32 }
 0x775   :  { %1604 = vmatpush1.msra.mxu1 %v5917_v13  ;;  %v5924_v13 = vld [vmem:[#allocation35_spill] sm:$0xff] }
 0x776   :  { %4080 = vmatprep.subr.mxu1 %v5918_v26 }
 0x816   :  { %v3978_v31 = vpop.f32.mrf.mxu1 }
 0x817   :  { %v1491_v17 = vadd.f32 %v3978_v31, %v5919_v21 }
 0x818   :  { %v1481_v33 = vpop.f32.mrf.mxu1 }
 0x819   :  { %v1490_v29 = vadd.f32 %v1481_v33, %v5920_v14  ;;  %v1568_v10 = vadd.f32 %v4013_v24, %v1491_v17  ;;  %v5926_v24 = vld [vmem:[#allocation36_spill] sm:$0xff]  ;;  %v5932_v17 = vld [vmem:[#allocation43_spill] sm:$0xff] }
 0x81a   :  { %v5933_v33 = vld [vmem:[#allocation44_spill] sm:$0xff] }
 0x81b   :  { %v1567_v19 = vadd.f32 %v1558_v20, %v1490_v29  ;;  %v1570_v32 = vadd.f32 %v1568_v10, %v5923_v23  ;;  %v5930_v23 = vld [vmem:[#allocation41_spill] sm:$0xff]  ;;  %v5935_v20 = vld [vmem:[#allocation46_spill] sm:$0xff]  ;;  %v5936_v10 = vld [vmem:[#allocation47_spill] sm:$0xff] }
 0x81c   :  { %v5934_v29 = vld [vmem:[#allocation45_spill] sm:$0xff] }
 0x81d   :  { %v1569_v22 = vadd.f32 %v1567_v19, %v5921_v16  ;;  %v5368_v31 = vmax.f32 %v1570_v32, 0.0  ;;  %v5927_v16 = vld [vmem:[#allocation38_spill] sm:$0xff]  ;;  %v5928_v19 = vld [vmem:[#allocation39_spill] sm:$0xff] }
 0x81e   :  { %v5931_v32 = vld [vmem:[#allocation42_spill] sm:$0xff] }
 0x81f   :  { %v5361_v15 = vmax.f32 %v1569_v22, 0.0  ;;  %5925 = vst [vmem:[#allocation37_spill] sm:$0xff] %v5368_v31  ;;  %v5929_v22 = vld [vmem:[#allocation40_spill] sm:$0xff] }
 0x821   :  { %5922 = vst [vmem:[#allocation34_spill] sm:$0xff] %v5361_v15  ;;  %1638 = vmatmul.mubr.f32.vlgmr.msra.gmra.mxu1 %v5361_v15 }
 0x822   :  { %4081 = vmatpush3.msra.mxu1 %v5918_v26  ;;  %1643 = vmatprep.mubr.f32.mxu1 %v5883_v18 }
 0x823   :  { %4082 = vmatprep.subr.mxu1 %v5924_v13 }
 0x824   :  { %4083 = vmatpush3.msra.mxu1 %v5924_v13 }
 0x825   :  { %4084 = vmatprep.subr.mxu1 %v5926_v24  ;;  %1644 = vmatmul.mubr.f32.gmra.mxu1 %v5368_v31 }
 0x826   :  { %4085 = vmatpush3.msra.mxu1 %v5926_v24  ;;  %4112 = vmatprep.mubr.f32.mxu1 %v5361_v15 }
 0x827   :  { %4086 = vmatprep.subr.mxu1 %v5927_v16 }
 0x828   :  { %4087 = vmatpush3.msra.mxu1 %v5927_v16 }
 0x829   :  { %4088 = vmatprep.subr.mxu1 %v5928_v19 }
 0x82a   :  { %4089 = vmatpush3.msra.mxu1 %v5928_v19 }
 0x82b   :  { %4090 = vmatprep.subr.mxu1 %v5929_v22 }
 0x82c   :  { %4091 = vmatpush3.msra.mxu1 %v5929_v22  ;;  %v5941_v22 = vld [vmem:[#allocation52_spill] sm:$0xff] }
 0x82d   :  { %4092 = vmatprep.subr.mxu1 %v5930_v23 }
 0x82e   :  { %4093 = vmatpush3.msra.mxu1 %v5930_v23 }
 0x82f   :  { %4094 = vmatprep.subr.mxu1 %v5931_v32 }
 0x830   :  { %4095 = vmatpush3.msra.mxu1 %v5931_v32  ;;  %v5937_v32 = vld [vmem:[#allocation48_spill] sm:$0xff] }
 0x831   :  { %4096 = vmatprep.subr.mxu1 %v5932_v17 }
 0x832   :  { %4097 = vmatpush3.msra.mxu1 %v5932_v17  ;;  %v5938_v17 = vld [vmem:[#allocation49_spill] sm:$0xff] }
 0x833   :  { %4098 = vmatprep.subr.mxu1 %v5933_v33 }
 0x834   :  { %4099 = vmatpush3.msra.mxu1 %v5933_v33  ;;  %v5939_v33 = vld [vmem:[#allocation50_spill] sm:$0xff] }
 0x835   :  { %4100 = vmatprep.subr.mxu1 %v5934_v29 }
 0x836   :  { %4101 = vmatpush3.msra.mxu1 %v5934_v29  ;;  %v5940_v29 = vld [vmem:[#allocation51_spill] sm:$0xff] }
 0x837   :  { %4102 = vmatprep.subr.mxu1 %v5935_v20 }
 0x838   :  { %4103 = vmatpush3.msra.mxu1 %v5935_v20 }
 0x839   :  { %4104 = vmatprep.subr.mxu1 %v5936_v10 }
 0x83a   :  { %4105 = vmatpush3.msra.mxu1 %v5936_v10 }
 0x83b   :  { %4106 = vmatprep.subr.mxu1 %v5937_v32 }
 0x83c   :  { %4107 = vmatpush3.msra.mxu1 %v5937_v32 }
 0x83d   :  { %4108 = vmatprep.subr.mxu1 %v5938_v17 }
 0x83e   :  { %4109 = vmatpush3.msra.mxu1 %v5938_v17  ;;  %v5942_v17 = vld [vmem:[#allocation53_spill] sm:$0xff] }
 0x83f   :  { %4110 = vmatprep.subr.mxu1 %v5939_v33 }
 0x840   :  { %4111 = vmatpush3.msra.mxu1 %v5939_v33  ;;  %v5943_v33 = vld [vmem:[#allocation54_spill] sm:$0xff] }
 0x841   :  { %4113 = vmatmul.mubr.f32.vlgmr.msra.gmra.mxu1 %v5368_v31 }
 0x842   :  { %4119 = vmatprep.mubr.msk.f32.mxu1 %vm1133_vm1, %v5940_v29  ;;  %v5944_v29 = vld [vmem:[#allocation55_spill] sm:$0xff] }
 0x8e1   :  { %v1639_v20 = vpop.f32.mrf.mxu1 }
 0x8e3   :  { %v1641_v23 = vpop.f32.mrf.mxu1 }
 0x8e5   :  { %v1645_v10 = vpop.f32.mrf.mxu1 }
 0x8e6   :  { %4014 = vmatprep.subr.mxu0 %v1645_v10 }
 0x8e7   :  { %4015 = vmatpush3.msra.mxu0 %v1645_v10  ;;  %v1647_v32 = vpop.f32.mrf.mxu1  ;;  %v5945_v10 = vld [vmem:[#allocation56_spill] sm:$0xff] }
 0x8e8   :  { %4016 = vmatprep.subr.mxu0 %v1639_v20 }
 0x8e9   :  { %4017 = vmatpush3.msra.mxu0 %v1639_v20  ;;  %v5946_v20 = vld [vmem:[#allocation57_spill] sm:$0xff] }
 0x8ea   :  { %4019 = vmatmul.mubr.msk.f32.vlgmr.msra.gmra.mxu0 %vm1133_vm1, %v5941_v22  ;;  %4024 = vmatprep.subr.mxu0 %v1647_v32  ;;  %v5947_v22 = vld [vmem:[#allocation58_spill] sm:$0xff] }
 0x8eb   :  { %4025 = vmatpush3.msra.mxu0 %v1647_v32  ;;  %4021 = vmatprep.mubr.msk.f32.mxu0 %vm1133_vm1, %v5942_v17  ;;  %v5948_v32 = vld [vmem:[#allocation21_spill] sm:$0xff] }
 0x8ec   :  { %4026 = vmatprep.subr.mxu0 %v1641_v23 }
 0x8ed   :  { %4027 = vmatpush3.msra.mxu0 %v1641_v23 }
 0x8ee   :  { %4022 = vmatmul.mubr.msk.f32.gmra.mxu0 %vm1133_vm1, %v5943_v33 }
 0x8ef   :  { %4028 = vmatprep.mubr.msk.f32.mxu0 %vm1133_vm1, %v5944_v29 }
 0x8f2   :  { %4029 = vmatmul.mubr.msk.f32.vlgmr.msra.gmra.mxu0 %vm1133_vm1, %v5945_v10 }
 0x8f3   :  { %4031 = vmatprep.mubr.msk.f32.mxu0 %vm1133_vm1, %v5946_v20 }
 0x8f6   :  { %4032 = vmatmul.mubr.msk.f32.gmra.mxu0 %vm1133_vm1, %v5947_v22 }
 0x8f7   :  { %4042 = vmatprep.mubr.msk.f32.mxu0 %vm895_vm0, %v5948_v32 }
 0x9aa   :  { %v4020_v17 = vpop.f32.mrf.mxu0 }
 0x9ab   :  { %v1736_v10 = vadd.f32 %v4020_v17, %v4966_v27  ;;  %v5982_v17 = vld [vmem:[#allocation55_spill] sm:$0xff] }
 0x9ac   :  { %v1716_v23 = vpop.f32.mrf.mxu0 }
 0x9ad   :  { %v1735_v22 = vadd.f32 %v1716_v23, %v4971_v30 }
 0x9ae   :  { %v4023_v19 = vpop.f32.mrf.mxu0 }
 0x9af   :  { %v1738_v29 = vadd.f32 %v4023_v19, %v4964_v25 }
 0x9b0   :  { %v1726_v16 = vpop.f32.mrf.mxu0 }
 0x9b1   :  { %v1737_v31 = vadd.f32 %v1726_v16, %v4968_v28  ;;  %v5980_v16 = vld [vmem:[#allocation53_spill] sm:$0xff] }
 0x9b2   :  { %v4030_v33 = vpop.f32.mrf.mxu0 }
 0x9b3   :  { %v1825_v14 = vadd.f32 %v4030_v33, %v1736_v10  ;;  %v5983_v33 = vld [vmem:[#allocation56_spill] sm:$0xff]  ;;  %v5985_v10 = vld [vmem:[#allocation58_spill] sm:$0xff] }
 0x9b4   :  { %v1805_v24 = vpop.f32.mrf.mxu0 }
 0x9b5   :  { %v1824_v26 = vadd.f32 %v1805_v24, %v1735_v22  ;;  %v1829_v11 = vmax.f32 %v1825_v14, 0.0  ;;  %v5979_v24 = vld [vmem:[#allocation52_spill] sm:$0xff]  ;;  %v5981_v22 = vld [vmem:[#allocation54_spill] sm:$0xff] }
 0x9b6   :  { %v4033_v13 = vpop.f32.mrf.mxu0 }
 0x9b7   :  { %v1827_v20 = vadd.f32 %v4033_v13, %v1738_v29  ;;  %v1828_v19 = vmax.f32 %v1824_v26, 0.0  ;;  %v5978_v13 = vld [vmem:[#allocation51_spill] sm:$0xff]  ;;  %v5984_v29 = vld [vmem:[#allocation57_spill] sm:$0xff] }
 0x9b8   :  { %v1815_v15 = vpop.f32.mrf.mxu0 }
 0x9b9   :  { %v1831_v21 = vmax.f32 %v1827_v20, 0.0  ;;  %v1826_v32 = vadd.f32 %v1815_v15, %v1737_v31  ;;  %v5977_v15 = vld [vmem:[#allocation50_spill] sm:$0xff]  ;;  %v5555_v20 = vld [vmem:[%s5867_s19] sm:$0xff] }
 0x9bb   :  { %v1830_v12 = vmax.f32 %v1826_v32, 0.0  ;;  %4034 = vmatprep.subr.mxu0 %v1831_v21 }
 0x9bc   :  { %4035 = vmatpush3.msra.mxu0 %v1831_v21 }
 0x9bd   :  { %4036 = vmatprep.subr.mxu0 %v1830_v12 }
 0x9be   :  { %4037 = vmatpush3.msra.mxu0 %v1830_v12  ;;  %v5976_v12 = vld [vmem:[#allocation49_spill] sm:$0xff] }
 0x9bf   :  { %4038 = vmatprep.subr.mxu0 %v1829_v11 }
 0x9c0   :  { %4039 = vmatpush3.msra.mxu0 %v1829_v11  ;;  %v5975_v11 = vld [vmem:[#allocation48_spill] sm:$0xff] }
 0x9c1   :  { %4040 = vmatprep.subr.mxu0 %v1828_v19 }
 0x9c2   :  { %4041 = vmatpush3.msra.mxu0 %v1828_v19 }
 0x9c3   :  { %4043 = vmatmul.mubr.msk.f32.vlgmr.msra.gmra.mxu0 %vm895_vm0, %v4979_v34  ;;  %4045 = vmatprep.subr.mxu0 %v4981_v35 }
 0x9c4   :  { %4046 = vmatpush3.msra.mxu0 %v4981_v35 }
 0x9c5   :  { %4047 = vmatprep.subr.mxu0 %v4983_v36 }
 0x9c6   :  { %4048 = vmatpush3.msra.mxu0 %v4983_v36  ;;  %v5949_v36 = vld [vmem:[#allocation22_spill] sm:$0xff] }
 0x9c7   :  { %4049 = vmatprep.subr.mxu0 %v4989_v37 }
 0x9c8   :  { %4050 = vmatpush3.msra.mxu0 %v4989_v37  ;;  %v5950_v37 = vld [vmem:[#allocation23_spill] sm:$0xff] }
 0x9c9   :  { %4051 = vmatprep.subr.mxu0 %v4993_v38 }
 0x9ca   :  { %4052 = vmatpush3.msra.mxu0 %v4993_v38  ;;  %v5951_v38 = vld [vmem:[#allocation24_spill] sm:$0xff] }
 0x9cb   :  { %4053 = vmatprep.subr.mxu0 %v4997_v39 }
 0x9cc   :  { %4054 = vmatpush3.msra.mxu0 %v4997_v39  ;;  %v5952_v39 = vld [vmem:[#allocation25_spill] sm:$0xff] }
 0x9cd   :  { %4055 = vmatprep.subr.mxu0 %v5001_v40 }
 0x9ce   :  { %4056 = vmatpush3.msra.mxu0 %v5001_v40  ;;  %v5953_v40 = vld [vmem:[#allocation26_spill] sm:$0xff] }
 0x9cf   :  { %4057 = vmatprep.subr.mxu0 %v5005_v41 }
 0x9d0   :  { %4058 = vmatpush3.msra.mxu0 %v5005_v41  ;;  %v5954_v41 = vld [vmem:[#allocation27_spill] sm:$0xff] }
 0x9d1   :  { %4059 = vmatprep.subr.mxu0 %v5009_v42 }
 0x9d2   :  { %4060 = vmatpush3.msra.mxu0 %v5009_v42  ;;  %v5955_v42 = vld [vmem:[#allocation28_spill] sm:$0xff] }
 0x9d3   :  { %4061 = vmatprep.subr.mxu0 %v5013_v43 }
 0x9d4   :  { %4062 = vmatpush3.msra.mxu0 %v5013_v43  ;;  %v5956_v43 = vld [vmem:[#allocation29_spill] sm:$0xff] }
 0x9d5   :  { %4063 = vmatprep.subr.mxu0 %v5017_v44 }
 0x9d6   :  { %4064 = vmatpush3.msra.mxu0 %v5017_v44  ;;  %v5957_v44 = vld [vmem:[#allocation30_spill] sm:$0xff] }
 0x9d7   :  { %4065 = vmatprep.subr.mxu0 %v5021_v45 }
 0x9d8   :  { %4066 = vmatpush3.msra.mxu0 %v5021_v45  ;;  %v5958_v45 = vld [vmem:[#allocation31_spill] sm:$0xff] }
 0x9d9   :  { %4067 = vmatprep.subr.mxu0 %v5025_v46 }
 0x9da   :  { %4068 = vmatpush3.msra.mxu0 %v5025_v46  ;;  %v4114_v46 = vpop.f32.mrf.mxu1 }
 0x9db   :  { %4069 = vmatprep.subr.mxu0 %v5029_v47 }
 0x9dc   :  { %4070 = vmatpush3.msra.mxu0 %v5029_v47 }
 0x9dd   :  { %4071 = vmatprep.subr.mxu0 %v5033_v48 }
 0x9de   :  { %4072 = vmatpush3.msra.mxu0 %v5033_v48  ;;  %v5959_v48 = vld [vmem:[#allocation33_spill] sm:$0xff] }
 0x9df   :  { %4073 = vmatprep.subr.mxu0 %v5039_v49 }
 0x9e0   :  { %4074 = vmatpush3.msra.mxu0 %v5039_v49 }
 0x9e1   :  { %4075 = vmatprep.subr.mxu0 %v5043_v50 }
 0x9e2   :  { %4076 = vmatpush3.msra.mxu0 %v5043_v50 }
 0x9e3   :  { %2065 = vmatprep.subr.mxu0 %v5047_v51  ;;  %v5960_v51 = vld [vmem:[#allocation32_spill] sm:$0xff] }
 0xa83   :  { %v4044_v34 = vpop.f32.mrf.mxu0 }
 0xa85   :  { %v1898_v35 = vpop.f32.mrf.mxu0 }
 0xa86   :  { %4077 = vmatprep.mubr.f32.mxu0 %v1898_v35 }
 0xa87   :  { %4078 = vmatmul.mubr.f32.vlgmr.msra.gmra.mxu0 %v4044_v34 }
 0xa88   :  { %2066 = vmatpush1.msra.mxu0 %v5049_v52  ;;  %2129 = vmatprep.mubr.f32.mxu0 %v5883_v18 }
 0xa89   :  { %2067 = vmatprep.subr.mxu0 %v5051_v53  ;;  %v2050_v53 = vpop.f32.mrf.mxu1 }
 0xa8a   :  { %2068 = vmatpush1.msra.mxu0 %v5054_v54 }
 0xa8b   :  { %2069 = vmatprep.subr.mxu0 %v5057_v55 }
 0xa8c   :  { %2070 = vmatpush1.msra.mxu0 %v5060_v56  ;;  %v5961_v56 = vld [vmem:[#allocation34_spill] sm:$0xff] }
 0xa8d   :  { %2071 = vmatprep.subr.mxu0 %v5063_v57 }
 0xa8e   :  { %2072 = vmatpush1.msra.mxu0 %v5066_v58 }
 0xa8f   :  { %2073 = vmatprep.subr.mxu0 %v5069_v59  ;;  %v5962_v59 = vld [vmem:[#allocation37_spill] sm:$0xff] }
 0xa90   :  { %2074 = vmatpush1.msra.mxu0 %v5072_v60 }
 0xa91   :  { %2075 = vmatprep.subr.mxu0 %v5075_v61  ;;  %v5963_v61 = vld [vmem:[#allocation35_spill] sm:$0xff] }
 0xa92   :  { %2076 = vmatpush1.msra.mxu0 %v5078_v62 }
 0xa93   :  { %2077 = vmatprep.subr.mxu0 %v5081_v63  ;;  %v5964_v63 = vld [vmem:[#allocation36_spill] sm:$0xff] }
 0xa94   :  { %2078 = vmatpush1.msra.mxu0 %v5084_v0  ;;  %v5965_v0 = vld [vmem:[#allocation38_spill] sm:$0xff] }
 0xa95   :  { %2079 = vmatprep.subr.mxu0 %v5087_v1  ;;  %v5966_v1 = vld [vmem:[#allocation39_spill] sm:$0xff] }
 0xa96   :  { %2080 = vmatpush1.msra.mxu0 %v5090_v2  ;;  %v5967_v2 = vld [vmem:[#allocation40_spill] sm:$0xff] }
 0xa97   :  { %2081 = vmatprep.subr.mxu0 %v5093_v3  ;;  %v5968_v3 = vld [vmem:[#allocation41_spill] sm:$0xff] }
 0xa98   :  { %2082 = vmatpush1.msra.mxu0 %v5096_v4  ;;  %v5969_v4 = vld [vmem:[#allocation42_spill] sm:$0xff] }
 0xa99   :  { %2083 = vmatprep.subr.mxu0 %v5099_v5  ;;  %v5970_v5 = vld [vmem:[#allocation43_spill] sm:$0xff] }
 0xa9a   :  { %2084 = vmatpush1.msra.mxu0 %v5102_v6  ;;  %v5971_v6 = vld [vmem:[#allocation44_spill] sm:$0xff] }
 0xa9b   :  { %2085 = vmatprep.subr.mxu0 %v5105_v7  ;;  %v5972_v7 = vld [vmem:[#allocation45_spill] sm:$0xff] }
 0xa9c   :  { %2086 = vmatpush1.msra.mxu0 %v5108_v8  ;;  %v5973_v8 = vld [vmem:[#allocation46_spill] sm:$0xff] }
 0xa9d   :  { %2087 = vmatprep.subr.mxu0 %v5111_v9  ;;  %v5974_v9 = vld [vmem:[#allocation47_spill] sm:$0xff] }
 0xa9e   :  { %2088 = vmatpush1.msra.mxu0 %v5949_v36 }
 0xa9f   :  { %2089 = vmatprep.subr.mxu0 %v5950_v37 }
 0xaa0   :  { %2090 = vmatpush1.msra.mxu0 %v5951_v38 }
 0xaa1   :  { %2091 = vmatprep.subr.mxu0 %v5952_v39 }
 0xaa2   :  { %2092 = vmatpush1.msra.mxu0 %v5953_v40 }
 0xaa3   :  { %2093 = vmatprep.subr.mxu0 %v5954_v41 }
 0xaa4   :  { %2094 = vmatpush1.msra.mxu0 %v5955_v42 }
 0xaa5   :  { %2095 = vmatprep.subr.mxu0 %v5956_v43 }
 0xaa6   :  { %2096 = vmatpush1.msra.mxu0 %v5957_v44 }
 0xaa7   :  { %4181 = vmatprep.subr.mxu0 %v5958_v45 }
 0xb47   :  { %v4079_v47 = vpop.f32.mrf.mxu0 }
 0xb48   :  { %v1983_v49 = vadd.f32 %v4079_v47, %v5959_v48 }
 0xb49   :  { %v1973_v50 = vpop.f32.mrf.mxu0 }
 0xb4a   :  { %v1982_v52 = vadd.f32 %v1973_v50, %v5960_v51  ;;  %v2060_v54 = vadd.f32 %v4114_v46, %v1983_v49 }
 0xb4c   :  { %v2059_v55 = vadd.f32 %v2050_v53, %v1982_v52  ;;  %v2062_v60 = vadd.f32 %v2060_v54, %v5962_v59  ;;  %v5566_v53 = vld [vmem:[%s5867_s19 + $0x8] sm:$0xff]  ;;  %v5570_v54 = vld [vmem:[#allocation10 + $0x78] sm:$0xff] }
 0xb4d   :  { %v5586_v59 = vld [vmem:[#allocation10 + $0x58] sm:$0xff] }
 0xb4e   :  { %v2061_v57 = vadd.f32 %v2059_v55, %v5961_v56  ;;  %v5502_v62 = vmax.f32 %v2062_v60, 0.0  ;;  %v5574_v55 = vld [vmem:[#allocation10 + $0x70] sm:$0xff]  ;;  %v5578_v56 = vld [vmem:[#allocation10 + $0x68] sm:$0xff] }
 0xb4f   :  { %v5590_v60 = vld [vmem:[#allocation10 + $0x50] sm:$0xff] }
 0xb50   :  { %v5495_v58 = vmax.f32 %v2061_v57, 0.0  ;;  %v5582_v57 = vld [vmem:[#allocation10 + $0x60] sm:$0xff] }
 0xb52   :  { %2130 = vmatmul.mubr.f32.vlgmr.msra.gmra.mxu0 %v5495_v58 }
 0xb53   :  { %4182 = vmatpush3.msra.mxu0 %v5958_v45  ;;  %2135 = vmatprep.mubr.f32.mxu0 %v5883_v18 }
 0xb54   :  { %4183 = vmatprep.subr.mxu0 %v5963_v61 }
 0xb55   :  { %4184 = vmatpush3.msra.mxu0 %v5963_v61  ;;  %v5594_v61 = vld [vmem:[#allocation10 + $0x48] sm:$0xff] }
 0xb56   :  { %4185 = vmatprep.subr.mxu0 %v5964_v63  ;;  %2136 = vmatmul.mubr.f32.gmra.mxu0 %v5502_v62 }
 0xb57   :  { %4186 = vmatpush3.msra.mxu0 %v5964_v63  ;;  %4213 = vmatprep.mubr.f32.mxu0 %v5495_v58  ;;  %v5598_v63 = vld [vmem:[#allocation10 + $0x40] sm:$0xff] }
 0xb58   :  { %4187 = vmatprep.subr.mxu0 %v5965_v0 }
 0xb59   :  { %4188 = vmatpush3.msra.mxu0 %v5965_v0  ;;  %v5602_v0 = vld [vmem:[#allocation10 + $0x38] sm:$0xff] }
 0xb5a   :  { %4189 = vmatprep.subr.mxu0 %v5966_v1 }
 0xb5b   :  { %4190 = vmatpush3.msra.mxu0 %v5966_v1  ;;  %v5606_v1 = vld [vmem:[#allocation10 + $0x30] sm:$0xff] }
 0xb5c   :  { %4191 = vmatprep.subr.mxu0 %v5967_v2 }
 0xb5d   :  { %4192 = vmatpush3.msra.mxu0 %v5967_v2  ;;  %v5610_v2 = vld [vmem:[#allocation10 + $0x28] sm:$0xff] }
 0xb5e   :  { %4193 = vmatprep.subr.mxu0 %v5968_v3 }
 0xb5f   :  { %4194 = vmatpush3.msra.mxu0 %v5968_v3  ;;  %v5614_v3 = vld [vmem:[#allocation10 + $0x20] sm:$0xff] }
 0xb60   :  { %4195 = vmatprep.subr.mxu0 %v5969_v4 }
 0xb61   :  { %4196 = vmatpush3.msra.mxu0 %v5969_v4  ;;  %v5618_v4 = vld [vmem:[#allocation10 + $0x18] sm:$0xff] }
 0xb62   :  { %4197 = vmatprep.subr.mxu0 %v5970_v5 }
 0xb63   :  { %4198 = vmatpush3.msra.mxu0 %v5970_v5  ;;  %v5622_v5 = vld [vmem:[#allocation10 + $0x10] sm:$0xff] }
 0xb64   :  { %4199 = vmatprep.subr.mxu0 %v5971_v6 }
 0xb65   :  { %4200 = vmatpush3.msra.mxu0 %v5971_v6  ;;  %v5626_v6 = vld [vmem:[#allocation10 + $0x8] sm:$0xff] }
 0xb66   :  { %4201 = vmatprep.subr.mxu0 %v5972_v7 }
 0xb67   :  { %4202 = vmatpush3.msra.mxu0 %v5972_v7  ;;  %v5630_v7 = vld [vmem:[#allocation10] sm:$0xff] }
 0xb68   :  { %4203 = vmatprep.subr.mxu0 %v5973_v8 }
 0xb69   :  { %4204 = vmatpush3.msra.mxu0 %v5973_v8  ;;  %v4422_v8 = vld [vmem:[#allocation7 + $0xf8] sm:$0xff] }
 0xb6a   :  { %4205 = vmatprep.subr.mxu0 %v5974_v9 }
 0xb6b   :  { %4206 = vmatpush3.msra.mxu0 %v5974_v9 }
 0xb6c   :  { %4207 = vmatprep.subr.mxu0 %v5975_v11 }
 0xb6d   :  { %4208 = vmatpush3.msra.mxu0 %v5975_v11 }
 0xb6e   :  { %4209 = vmatprep.subr.mxu0 %v5976_v12 }
 0xb6f   :  { %4210 = vmatpush3.msra.mxu0 %v5976_v12  ;;  %v4423_v12 = vld [vmem:[#allocation7 + $0xf0] sm:$0xff] }
 0xb70   :  { %4211 = vmatprep.subr.mxu0 %v5977_v15 }
 0xb71   :  { %4212 = vmatpush3.msra.mxu0 %v5977_v15  ;;  %v4424_v15 = vld [vmem:[#allocation7 + $0xe8] sm:$0xff] }
 0xb72   :  { %4214 = vmatmul.mubr.f32.vlgmr.msra.gmra.mxu0 %v5502_v62 }
 0xb73   :  { %4220 = vmatprep.mubr.msk.f32.mxu0 %vm1133_vm1, %v5978_v13  ;;  %v4425_v13 = vld [vmem:[#allocation7 + $0xe0] sm:$0xff] }
 0xc12   :  { %v2131_v26 = vpop.f32.mrf.mxu0 }
 0xc14   :  { %v2133_v21 = vpop.f32.mrf.mxu0 }
 0xc16   :  { %v2137_v14 = vpop.f32.mrf.mxu0 }
 0xc17   :  { %4115 = vmatprep.subr.mxu1 %v2137_v14 }
 0xc18   :  { %4116 = vmatpush3.msra.mxu1 %v2137_v14  ;;  %v2139_v31 = vpop.f32.mrf.mxu0  ;;  %v4428_v14 = vld [vmem:[#allocation7 + $0xc8] sm:$0xff] }
 0xc19   :  { %4117 = vmatprep.subr.mxu1 %v2131_v26 }
 0xc1a   :  { %4118 = vmatpush3.msra.mxu1 %v2131_v26  ;;  %v4426_v26 = vld [vmem:[#allocation7 + $0xd8] sm:$0xff] }
 0xc1b   :  { %4120 = vmatmul.mubr.msk.f32.vlgmr.msra.gmra.mxu1 %vm1133_vm1, %v5979_v24  ;;  %4125 = vmatprep.subr.mxu1 %v2139_v31  ;;  %v4430_v24 = vld [vmem:[#allocation7 + $0xb8] sm:$0xff] }
 0xc1c   :  { %4126 = vmatpush3.msra.mxu1 %v2139_v31  ;;  %4122 = vmatprep.mubr.msk.f32.mxu1 %vm1133_vm1, %v5980_v16  ;;  %v4429_v31 = vld [vmem:[#allocation7 + $0xc0] sm:$0xff]  ;;  %v4431_v16 = vld [vmem:[#allocation7 + $0xb0] sm:$0xff] }
 0xc1d   :  { %4127 = vmatprep.subr.mxu1 %v2133_v21 }
 0xc1e   :  { %4128 = vmatpush3.msra.mxu1 %v2133_v21  ;;  %v4427_v21 = vld [vmem:[#allocation7 + $0xd0] sm:$0xff] }
 0xc1f   :  { %4123 = vmatmul.mubr.msk.f32.gmra.mxu1 %vm1133_vm1, %v5981_v22 }
 0xc20   :  { %4129 = vmatprep.mubr.msk.f32.mxu1 %vm1133_vm1, %v5982_v17 }
 0xc23   :  { %4130 = vmatmul.mubr.msk.f32.vlgmr.msra.gmra.mxu1 %vm1133_vm1, %v5983_v33 }
 0xc24   :  { %4132 = vmatprep.mubr.msk.f32.mxu1 %vm1133_vm1, %v5984_v29 }
 0xc27   :  { %4133 = vmatmul.mubr.msk.f32.gmra.mxu1 %vm1133_vm1, %v5985_v10 }
 0xc28   :  { %4143 = vmatprep.mubr.msk.f32.mxu1 %vm895_vm0, %v5555_v20 }
 0xcdb   :  { %v4121_v23 = vpop.f32.mrf.mxu1 }
 0xcdc   :  { %v2228_v39 = vadd.f32 %v4121_v23, %v4966_v27  ;;  %v4432_v23 = vld [vmem:[#allocation7 + $0xa8] sm:$0xff] }
 0xcdd   :  { %v2208_v32 = vpop.f32.mrf.mxu1 }
 0xcde   :  { %v2227_v43 = vadd.f32 %v2208_v32, %v4971_v30  ;;  %v4433_v32 = vld [vmem:[#allocation7 + $0xa0] sm:$0xff] }
 0xcdf   :  { %v4124_v19 = vpop.f32.mrf.mxu1 }
 0xce0   :  { %v2230_v37 = vadd.f32 %v4124_v19, %v4964_v25  ;;  %v4434_v19 = vld [vmem:[#allocation7 + $0x98] sm:$0xff] }
 0xce1   :  { %v2218_v34 = vpop.f32.mrf.mxu1 }
 0xce2   :  { %v2229_v40 = vadd.f32 %v2218_v34, %v4968_v28  ;;  %v4435_v34 = vld [vmem:[#allocation7 + $0x90] sm:$0xff] }
 0xce3   :  { %v4131_v35 = vpop.f32.mrf.mxu1 }
 0xce4   :  { %v2317_v44 = vadd.f32 %v4131_v35, %v2228_v39  ;;  %v4436_v35 = vld [vmem:[#allocation7 + $0x88] sm:$0xff] }
 0xce5   :  { %v2297_v36 = vpop.f32.mrf.mxu1  ;;  %v4440_v39 = vld [vmem:[#allocation7 + $0x68] sm:$0xff] }
 0xce6   :  { %v2316_v47 = vadd.f32 %v2297_v36, %v2227_v43  ;;  %v2321_v50 = vmax.f32 %v2317_v44, 0.0  ;;  %v4437_v36 = vld [vmem:[#allocation7 + $0x80] sm:$0xff]  ;;  %v4444_v43 = vld [vmem:[#allocation7 + $0x48] sm:$0xff] }
 0xce7   :  { %v4134_v38 = vpop.f32.mrf.mxu1  ;;  %v4445_v44 = vld [vmem:[#allocation7 + $0x40] sm:$0xff] }
 0xce8   :  { %v2319_v41 = vadd.f32 %v4134_v38, %v2230_v37  ;;  %v2320_v52 = vmax.f32 %v2316_v47, 0.0  ;;  %v4438_v37 = vld [vmem:[#allocation7 + $0x78] sm:$0xff]  ;;  %v4439_v38 = vld [vmem:[#allocation7 + $0x70] sm:$0xff]  ;;  %v4448_v47 = vld [vmem:[#allocation7 + $0x28] sm:$0xff] }
 0xce9   :  { %v2307_v42 = vpop.f32.mrf.mxu1 }
 0xcea   :  { %v2323_v45 = vmax.f32 %v2319_v41, 0.0  ;;  %v2318_v46 = vadd.f32 %v2307_v42, %v2229_v40  ;;  %v4441_v40 = vld [vmem:[#allocation7 + $0x60] sm:$0xff]  ;;  %v4442_v41 = vld [vmem:[#allocation7 + $0x58] sm:$0xff]  ;;  %v4443_v42 = vld [vmem:[#allocation7 + $0x50] sm:$0xff] }
 0xcec   :  { %v2322_v49 = vmax.f32 %v2318_v46, 0.0  ;;  %4135 = vmatprep.subr.mxu1 %v2323_v45  ;;  %v4447_v46 = vld [vmem:[#allocation7 + $0x30] sm:$0xff] }
 0xced   :  { %4136 = vmatpush3.msra.mxu1 %v2323_v45  ;;  %v4446_v45 = vld [vmem:[#allocation7 + $0x38] sm:$0xff] }
 0xcee   :  { %4137 = vmatprep.subr.mxu1 %v2322_v49 }
 0xcef   :  { %4138 = vmatpush3.msra.mxu1 %v2322_v49  ;;  %v4449_v49 = vld [vmem:[#allocation7 + $0x20] sm:$0xff] }
 0xcf0   :  { %4139 = vmatprep.subr.mxu1 %v2321_v50 }
 0xcf1   :  { %4140 = vmatpush3.msra.mxu1 %v2321_v50  ;;  %v4450_v50 = vld [vmem:[#allocation7 + $0x18] sm:$0xff] }
 0xcf2   :  { %4141 = vmatprep.subr.mxu1 %v2320_v52 }
 0xcf3   :  { %4142 = vmatpush3.msra.mxu1 %v2320_v52  ;;  %v4451_v52 = vld [vmem:[#allocation7 + $0x10] sm:$0xff] }
 0xcf4   :  { %4144 = vmatmul.mubr.msk.f32.vlgmr.msra.gmra.mxu1 %vm895_vm0, %v5566_v53  ;;  %4146 = vmatprep.subr.mxu1 %v5570_v54 }
 0xcf5   :  { %4147 = vmatpush3.msra.mxu1 %v5570_v54 }
 0xcf6   :  { %4148 = vmatprep.subr.mxu1 %v5574_v55 }
 0xcf7   :  { %4149 = vmatpush3.msra.mxu1 %v5574_v55 }
 0xcf8   :  { %4150 = vmatprep.subr.mxu1 %v5578_v56 }
 0xcf9   :  { %4151 = vmatpush3.msra.mxu1 %v5578_v56 }
 0xcfa   :  { %4152 = vmatprep.subr.mxu1 %v5582_v57 }
 0xcfb   :  { %4153 = vmatpush3.msra.mxu1 %v5582_v57 }
 0xcfc   :  { %4154 = vmatprep.subr.mxu1 %v5586_v59 }
 0xcfd   :  { %4155 = vmatpush3.msra.mxu1 %v5586_v59 }
 0xcfe   :  { %4156 = vmatprep.subr.mxu1 %v5590_v60 }
 0xcff   :  { %4157 = vmatpush3.msra.mxu1 %v5590_v60 }
 0xd00   :  { %4158 = vmatprep.subr.mxu1 %v5594_v61 }
 0xd01   :  { %4159 = vmatpush3.msra.mxu1 %v5594_v61 }
 0xd02   :  { %4160 = vmatprep.subr.mxu1 %v5598_v63 }
 0xd03   :  { %4161 = vmatpush3.msra.mxu1 %v5598_v63 }
 0xd04   :  { %4162 = vmatprep.subr.mxu1 %v5602_v0 }
 0xd05   :  { %4163 = vmatpush3.msra.mxu1 %v5602_v0 }
 0xd06   :  { %4164 = vmatprep.subr.mxu1 %v5606_v1 }
 0xd07   :  { %4165 = vmatpush3.msra.mxu1 %v5606_v1 }
 0xd08   :  { %4166 = vmatprep.subr.mxu1 %v5610_v2 }
 0xd09   :  { %4167 = vmatpush3.msra.mxu1 %v5610_v2 }
 0xd0a   :  { %4168 = vmatprep.subr.mxu1 %v5614_v3 }
 0xd0b   :  { %4169 = vmatpush3.msra.mxu1 %v5614_v3 }
 0xd0c   :  { %4170 = vmatprep.subr.mxu1 %v5618_v4 }
 0xd0d   :  { %4171 = vmatpush3.msra.mxu1 %v5618_v4 }
 0xd0e   :  { %4172 = vmatprep.subr.mxu1 %v5622_v5 }
 0xd0f   :  { %4173 = vmatpush3.msra.mxu1 %v5622_v5 }
 0xd10   :  { %4174 = vmatprep.subr.mxu1 %v5626_v6 }
 0xd11   :  { %4175 = vmatpush3.msra.mxu1 %v5626_v6 }
 0xd12   :  { %4176 = vmatprep.subr.mxu1 %v5630_v7 }
 0xd13   :  { %4177 = vmatpush3.msra.mxu1 %v5630_v7 }
 0xd14   :  { %2557 = vmatprep.subr.mxu1 %v4422_v8  ;;  %v4452_v8 = vld [vmem:[#allocation7 + $0x8] sm:$0xff] }
 0xdb4   :  { %v4145_v9 = vpop.f32.mrf.mxu1 }
 0xdb6   :  { %v2390_v11 = vpop.f32.mrf.mxu1 }
 0xdb7   :  { %4178 = vmatprep.mubr.f32.mxu1 %v2390_v11  ;;  %v4454_v11 = vld [vmem:[#allocation12 + $0x78] sm:$0xff] }
 0xdb8   :  { %4179 = vmatmul.mubr.f32.vlgmr.msra.gmra.mxu1 %v4145_v9  ;;  %v4453_v9 = vld [vmem:[#allocation7] sm:$0xff] }
 0xdb9   :  { %2558 = vmatpush1.msra.mxu1 %v4423_v12  ;;  %2621 = vmatprep.mubr.f32.mxu1 %v5883_v18  ;;  %v4215_v12 = vpop.f32.mrf.mxu0 }
 0xdba   :  { %2559 = vmatprep.subr.mxu1 %v4424_v15 }
 0xdbb   :  { %2560 = vmatpush1.msra.mxu1 %v4425_v13 }
 0xdbc   :  { %2561 = vmatprep.subr.mxu1 %v4426_v26 }
 0xdbd   :  { %2562 = vmatpush1.msra.mxu1 %v4427_v21 }
 0xdbe   :  { %2563 = vmatprep.subr.mxu1 %v4428_v14  ;;  %v2542_v14 = vpop.f32.mrf.mxu0 }
 0xdbf   :  { %2564 = vmatpush1.msra.mxu1 %v4429_v31 }
 0xdc0   :  { %2565 = vmatprep.subr.mxu1 %v4430_v24 }
 0xdc1   :  { %2566 = vmatpush1.msra.mxu1 %v4431_v16 }
 0xdc2   :  { %2567 = vmatprep.subr.mxu1 %v4432_v23 }
 0xdc3   :  { %2568 = vmatpush1.msra.mxu1 %v4433_v32 }
 0xdc4   :  { %2569 = vmatprep.subr.mxu1 %v4434_v19  ;;  %v4455_v19 = vld [vmem:[#allocation12 + $0x70] sm:$0xff] }
 0xdc5   :  { %2570 = vmatpush1.msra.mxu1 %v4435_v34 }
 0xdc6   :  { %2571 = vmatprep.subr.mxu1 %v4436_v35  ;;  %v4456_v35 = vld [vmem:[#allocation12 + $0x68] sm:$0xff] }
 0xdc7   :  { %2572 = vmatpush1.msra.mxu1 %v4437_v36  ;;  %v4459_v36 = vld [vmem:[#allocation12 + $0x50] sm:$0xff] }
 0xdc8   :  { %2573 = vmatprep.subr.mxu1 %v4438_v37  ;;  %v4461_v37 = vld [vmem:[#allocation12 + $0x40] sm:$0xff] }
 0xdc9   :  { %2574 = vmatpush1.msra.mxu1 %v4439_v38  ;;  %v4462_v38 = vld [vmem:[#allocation12 + $0x38] sm:$0xff] }
 0xdca   :  { %2575 = vmatprep.subr.mxu1 %v4440_v39  ;;  %v4463_v39 = vld [vmem:[#allocation12 + $0x30] sm:$0xff] }
 0xdcb   :  { %2576 = vmatpush1.msra.mxu1 %v4441_v40  ;;  %v4464_v40 = vld [vmem:[#allocation12 + $0x28] sm:$0xff] }
 0xdcc   :  { %2577 = vmatprep.subr.mxu1 %v4442_v41  ;;  %v4465_v41 = vld [vmem:[#allocation12 + $0x20] sm:$0xff] }
 0xdcd   :  { %2578 = vmatpush1.msra.mxu1 %v4443_v42  ;;  %v4466_v42 = vld [vmem:[#allocation12 + $0x18] sm:$0xff] }
 0xdce   :  { %2579 = vmatprep.subr.mxu1 %v4444_v43  ;;  %v4467_v43 = vld [vmem:[#allocation12 + $0x10] sm:$0xff] }
 0xdcf   :  { %2580 = vmatpush1.msra.mxu1 %v4445_v44  ;;  %v4468_v44 = vld [vmem:[#allocation12 + $0x8] sm:$0xff] }
 0xdd0   :  { %2581 = vmatprep.subr.mxu1 %v4446_v45  ;;  %v4469_v45 = vld [vmem:[#allocation12] sm:$0xff] }
 0xdd1   :  { %2582 = vmatpush1.msra.mxu1 %v4447_v46 }
 0xdd2   :  { %2583 = vmatprep.subr.mxu1 %v4448_v47 }
 0xdd3   :  { %2584 = vmatpush1.msra.mxu1 %v4449_v49 }
 0xdd4   :  { %2585 = vmatprep.subr.mxu1 %v4450_v50 }
 0xdd5   :  { %2586 = vmatpush1.msra.mxu1 %v4451_v52  ;;  %v4470_v52 = vld [vmem:[%s5899_s22 + $0x8] sm:$0xff] }
 0xdd6   :  { %2587 = vmatprep.subr.mxu1 %v4452_v8  ;;  %v4471_v8 = vld [vmem:[%s5899_s22 + $0x10] sm:$0xff] }
 0xdd7   :  { %2588 = vmatpush1.msra.mxu1 %v4453_v9 }
 0xdd8   :  { %4282 = vmatprep.subr.mxu1 %v4454_v11 }
 0xe78   :  { %v4180_v15 = vpop.f32.mrf.mxu1 }
 0xe79   :  { %v2475_v13 = vadd.f32 %v4180_v15, %v5959_v48 }
 0xe7a   :  { %v2465_v26 = vpop.f32.mrf.mxu1 }
 0xe7b   :  { %v2474_v21 = vadd.f32 %v2465_v26, %v5960_v51  ;;  %v2552_v31 = vadd.f32 %v4215_v12, %v2475_v13 }
 0xe7d   :  { %v2551_v24 = vadd.f32 %v2542_v14, %v2474_v21  ;;  %v2554_v32 = vadd.f32 %v2552_v31, %v5502_v62  ;;  %v4458_v62 = vld [vmem:[#allocation12 + $0x58] sm:$0xff] }
 0xe7f   :  { %v2553_v16 = vadd.f32 %v2551_v24, %v5495_v58  ;;  %v5643_v34 = vmax.f32 %v2554_v32, 0.0  ;;  %v4457_v58 = vld [vmem:[#allocation12 + $0x60] sm:$0xff] }
 0xe81   :  { %v5638_v23 = vmax.f32 %v2553_v16, 0.0 }
 0xe83   :  { %2622 = vmatmul.mubr.f32.vlgmr.msra.gmra.mxu1 %v5638_v23 }
 0xe84   :  { %4283 = vmatpush3.msra.mxu1 %v4454_v11  ;;  %2627 = vmatprep.mubr.f32.mxu1 %v5883_v18  ;;  %v4460_v18 = vld [vmem:[#allocation12 + $0x48] sm:$0xff] }
 0xe85   :  { %4284 = vmatprep.subr.mxu1 %v4455_v19 }
 0xe86   :  { %4285 = vmatpush3.msra.mxu1 %v4455_v19 }
 0xe87   :  { %4286 = vmatprep.subr.mxu1 %v4456_v35  ;;  %2628 = vmatmul.mubr.f32.gmra.mxu1 %v5643_v34 }
 0xe88   :  { %4287 = vmatpush3.msra.mxu1 %v4456_v35  ;;  %4314 = vmatprep.mubr.f32.mxu1 %v5638_v23  ;;  %v3162_v35 = vld [vmem:[#allocation15 + $0x68] sm:$0xff] }
 0xe89   :  { %4288 = vmatprep.subr.mxu1 %v4457_v58 }
 0xe8a   :  { %4289 = vmatpush3.msra.mxu1 %v4457_v58  ;;  %v3161_v58 = vld [vmem:[#allocation15 + $0x60] sm:$0xff] }
 0xe8b   :  { %4290 = vmatprep.subr.mxu1 %v4458_v62 }
 0xe8c   :  { %4291 = vmatpush3.msra.mxu1 %v4458_v62  ;;  %v3160_v62 = vld [vmem:[#allocation15 + $0x58] sm:$0xff] }
 0xe8d   :  { %4292 = vmatprep.subr.mxu1 %v4459_v36 }
 0xe8e   :  { %4293 = vmatpush3.msra.mxu1 %v4459_v36  ;;  %v3159_v36 = vld [vmem:[#allocation15 + $0x50] sm:$0xff] }
 0xe8f   :  { %4294 = vmatprep.subr.mxu1 %v4460_v18 }
 0xe90   :  { %4295 = vmatpush3.msra.mxu1 %v4460_v18  ;;  %v3158_v18 = vld [vmem:[#allocation15 + $0x48] sm:$0xff] }
 0xe91   :  { %4296 = vmatprep.subr.mxu1 %v4461_v37 }
 0xe92   :  { %4297 = vmatpush3.msra.mxu1 %v4461_v37  ;;  %v3157_v37 = vld [vmem:[#allocation15 + $0x40] sm:$0xff] }
 0xe93   :  { %4298 = vmatprep.subr.mxu1 %v4462_v38 }
 0xe94   :  { %4299 = vmatpush3.msra.mxu1 %v4462_v38  ;;  %v3156_v38 = vld [vmem:[#allocation15 + $0x38] sm:$0xff] }
 0xe95   :  { %4300 = vmatprep.subr.mxu1 %v4463_v39 }
 0xe96   :  { %4301 = vmatpush3.msra.mxu1 %v4463_v39  ;;  %v3155_v39 = vld [vmem:[#allocation15 + $0x30] sm:$0xff] }
 0xe97   :  { %4302 = vmatprep.subr.mxu1 %v4464_v40 }
 0xe98   :  { %4303 = vmatpush3.msra.mxu1 %v4464_v40  ;;  %v3154_v40 = vld [vmem:[#allocation15 + $0x28] sm:$0xff] }
 0xe99   :  { %4304 = vmatprep.subr.mxu1 %v4465_v41 }
 0xe9a   :  { %4305 = vmatpush3.msra.mxu1 %v4465_v41  ;;  %v3153_v41 = vld [vmem:[#allocation15 + $0x20] sm:$0xff] }
 0xe9b   :  { %4306 = vmatprep.subr.mxu1 %v4466_v42 }
 0xe9c   :  { %4307 = vmatpush3.msra.mxu1 %v4466_v42 }
 0xe9d   :  { %4308 = vmatprep.subr.mxu1 %v4467_v43 }
 0xe9e   :  { %4309 = vmatpush3.msra.mxu1 %v4467_v43 }
 0xe9f   :  { %4310 = vmatprep.subr.mxu1 %v4468_v44 }
 0xea0   :  { %4311 = vmatpush3.msra.mxu1 %v4468_v44 }
 0xea1   :  { %4312 = vmatprep.subr.mxu1 %v4469_v45 }
 0xea2   :  { %4313 = vmatpush3.msra.mxu1 %v4469_v45 }
 0xea3   :  { %4315 = vmatmul.mubr.f32.vlgmr.msra.gmra.mxu1 %v5643_v34 }
 0xf43   :  { %v2623_v46 = vpop.f32.mrf.mxu1 }
 0xf45   :  { %v2625_v47 = vpop.f32.mrf.mxu1 }
 0xf47   :  { %v2629_v49 = vpop.f32.mrf.mxu1 }
 0xf48   :  { %4216 = vmatprep.subr.mxu0 %v2629_v49 }
 0xf49   :  { %4217 = vmatpush3.msra.mxu0 %v2629_v49  ;;  %v2631_v50 = vpop.f32.mrf.mxu1 }
 0xf4a   :  { %4218 = vmatprep.subr.mxu0 %v2623_v46 }
 0xf4b   :  { %4219 = vmatpush3.msra.mxu0 %v2623_v46 }
 0xf4c   :  { %4221 = vmatmul.mubr.msk.f32.vlgmr.msra.gmra.mxu0 %vm1133_vm1, %v4470_v52  ;;  %4226 = vmatprep.subr.mxu0 %v2631_v50 }
 0xf4d   :  { %4227 = vmatpush3.msra.mxu0 %v2631_v50  ;;  %4223 = vmatprep.mubr.msk.f32.mxu0 %vm1133_vm1, %v4471_v8 }
 0xf4e   :  { %4228 = vmatprep.subr.mxu0 %v2625_v47 }
 0xf4f   :  { %4229 = vmatpush3.msra.mxu0 %v2625_v47 }
 0xf50   :  { %4224 = vmatmul.mubr.msk.f32.gmra.mxu0 %vm1133_vm1, %v5981_v22 }
 0xf51   :  { %4230 = vmatprep.mubr.msk.f32.mxu0 %vm1133_vm1, %v5982_v17 }
 0xf54   :  { %4231 = vmatmul.mubr.msk.f32.vlgmr.msra.gmra.mxu0 %vm1133_vm1, %v5983_v33 }
 0xf55   :  { %4233 = vmatprep.mubr.msk.f32.mxu0 %vm1133_vm1, %v5984_v29 }
 0xf58   :  { %4234 = vmatmul.mubr.msk.f32.gmra.mxu0 %vm1133_vm1, %v5985_v10 }
 0xf59   :  { %4244 = vmatprep.mubr.msk.f32.mxu0 %vm895_vm0, %v5555_v20 }
 0xf63   :  { %v4316_v42 = vpop.f32.mrf.mxu1 }
 0xf65   :  { %v3034_v49 = vpop.f32.mrf.mxu1 }
0x100c   :  { %v4222_v9 = vpop.f32.mrf.mxu0 }
0x100d   :  { %v2720_v33 = vadd.f32 %v4222_v9, %v4966_v27  ;;  %v3064_v27 = vld [vmem:[#allocation13 + $0x78] sm:$0xff] }
0x100e   :  { %v2700_v11 = vpop.f32.mrf.mxu0 }
0x100f   :  { %v2719_v10 = vadd.f32 %v2700_v11, %v4971_v30 }
0x1010   :  { %v4225_v12 = vpop.f32.mrf.mxu0 }
0x1011   :  { %v2722_v17 = vadd.f32 %v4225_v12, %v4964_v25  ;;  %v3152_v12 = vld [vmem:[#allocation15 + $0x18] sm:$0xff] }
0x1012   :  { %v2710_v15 = vpop.f32.mrf.mxu0 }
0x1013   :  { %v2721_v21 = vadd.f32 %v2710_v15, %v4968_v28  ;;  %v3151_v15 = vld [vmem:[#allocation15 + $0x10] sm:$0xff] }
0x1014   :  { %v4232_v22 = vpop.f32.mrf.mxu0 }
0x1015   :  { %v2809_v31 = vadd.f32 %v4232_v22, %v2720_v33  ;;  %v3149_v22 = vld [vmem:[#allocation15] sm:$0xff] }
0x1016   :  { %v2789_v13 = vpop.f32.mrf.mxu0 }
0x1017   :  { %v2808_v16 = vadd.f32 %v2789_v13, %v2719_v10  ;;  %v2813_v19 = vmax.f32 %v2809_v31, 0.0 }
0x1018   :  { %v4235_v26 = vpop.f32.mrf.mxu0 }
0x1019   :  { %v2811_v29 = vadd.f32 %v4235_v26, %v2722_v17  ;;  %v2812_v25 = vmax.f32 %v2808_v16, 0.0 }
0x101a   :  { %v2799_v14 = vpop.f32.mrf.mxu0 }
0x101b   :  { %v2815_v24 = vmax.f32 %v2811_v29, 0.0  ;;  %v2810_v20 = vadd.f32 %v2799_v14, %v2721_v21  ;;  %v3310_v21 = vld [vmem:[%s5747_s25] ss:$0 sm:$0xff] }
0x101d   :  { %v2814_v32 = vmax.f32 %v2810_v20, 0.0  ;;  %4236 = vmatprep.subr.mxu0 %v2815_v24 }
0x101e   :  { %4237 = vmatpush3.msra.mxu0 %v2815_v24 }
0x101f   :  { %4238 = vmatprep.subr.mxu0 %v2814_v32 }
0x1020   :  { %4239 = vmatpush3.msra.mxu0 %v2814_v32 }
0x1021   :  { %4240 = vmatprep.subr.mxu0 %v2813_v19 }
0x1022   :  { %4241 = vmatpush3.msra.mxu0 %v2813_v19 }
0x1023   :  { %4242 = vmatprep.subr.mxu0 %v2812_v25 }
0x1024   :  { %4243 = vmatpush3.msra.mxu0 %v2812_v25 }
0x1025   :  { %4245 = vmatmul.mubr.msk.f32.vlgmr.msra.gmra.mxu0 %vm895_vm0, %v5566_v53  ;;  %4247 = vmatprep.subr.mxu0 %v5570_v54  ;;  %v3063_v53 = vld [vmem:[#allocation13 + $0x70] sm:$0xff] }
0x1026   :  { %4248 = vmatpush3.msra.mxu0 %v5570_v54  ;;  %v3062_v54 = vld [vmem:[#allocation13 + $0x68] sm:$0xff] }
0x1027   :  { %4249 = vmatprep.subr.mxu0 %v5574_v55 }
0x1028   :  { %4250 = vmatpush3.msra.mxu0 %v5574_v55  ;;  %v3061_v55 = vld [vmem:[#allocation13 + $0x60] sm:$0xff] }
0x1029   :  { %4251 = vmatprep.subr.mxu0 %v5578_v56 }
0x102a   :  { %4252 = vmatpush3.msra.mxu0 %v5578_v56  ;;  %v3060_v56 = vld [vmem:[#allocation13 + $0x58] sm:$0xff] }
0x102b   :  { %4253 = vmatprep.subr.mxu0 %v5582_v57 }
0x102c   :  { %4254 = vmatpush3.msra.mxu0 %v5582_v57  ;;  %v3059_v57 = vld [vmem:[#allocation13 + $0x50] sm:$0xff] }
0x102d   :  { %4255 = vmatprep.subr.mxu0 %v5586_v59 }
0x102e   :  { %4256 = vmatpush3.msra.mxu0 %v5586_v59  ;;  %v3058_v59 = vld [vmem:[#allocation13 + $0x48] sm:$0xff] }
0x102f   :  { %4257 = vmatprep.subr.mxu0 %v5590_v60 }
0x1030   :  { %4258 = vmatpush3.msra.mxu0 %v5590_v60  ;;  %v3057_v60 = vld [vmem:[#allocation13 + $0x40] sm:$0xff] }
0x1031   :  { %4259 = vmatprep.subr.mxu0 %v5594_v61 }
0x1032   :  { %4260 = vmatpush3.msra.mxu0 %v5594_v61  ;;  %v3056_v61 = vld [vmem:[#allocation13 + $0x38] sm:$0xff] }
0x1033   :  { %4261 = vmatprep.subr.mxu0 %v5598_v63 }
0x1034   :  { %4262 = vmatpush3.msra.mxu0 %v5598_v63  ;;  %v3055_v63 = vld [vmem:[#allocation13 + $0x30] sm:$0xff] }
0x1035   :  { %4263 = vmatprep.subr.mxu0 %v5602_v0 }
0x1036   :  { %4264 = vmatpush3.msra.mxu0 %v5602_v0  ;;  %v3054_v0 = vld [vmem:[#allocation13 + $0x28] sm:$0xff] }
0x1037   :  { %4265 = vmatprep.subr.mxu0 %v5606_v1 }
0x1038   :  { %4266 = vmatpush3.msra.mxu0 %v5606_v1  ;;  %v3053_v1 = vld [vmem:[#allocation13 + $0x20] sm:$0xff] }
0x1039   :  { %4267 = vmatprep.subr.mxu0 %v5610_v2 }
0x103a   :  { %4268 = vmatpush3.msra.mxu0 %v5610_v2  ;;  %v3052_v2 = vld [vmem:[#allocation13 + $0x18] sm:$0xff] }
0x103b   :  { %4269 = vmatprep.subr.mxu0 %v5614_v3 }
0x103c   :  { %4270 = vmatpush3.msra.mxu0 %v5614_v3  ;;  %v3051_v3 = vld [vmem:[#allocation13 + $0x10] sm:$0xff] }
0x103d   :  { %4271 = vmatprep.subr.mxu0 %v5618_v4 }
0x103e   :  { %4272 = vmatpush3.msra.mxu0 %v5618_v4  ;;  %v3050_v4 = vld [vmem:[#allocation13 + $0x8] sm:$0xff] }
0x103f   :  { %4273 = vmatprep.subr.mxu0 %v5622_v5 }
0x1040   :  { %4274 = vmatpush3.msra.mxu0 %v5622_v5  ;;  %v3049_v5 = vld [vmem:[#allocation13] sm:$0xff] }
0x1041   :  { %4275 = vmatprep.subr.mxu0 %v5626_v6 }
0x1042   :  { %4276 = vmatpush3.msra.mxu0 %v5626_v6  ;;  %v3164_v6 = vld [vmem:[#allocation15 + $0x78] sm:$0xff] }
0x1043   :  { %4277 = vmatprep.subr.mxu0 %v5630_v7  ;;  %4352 = vmatprep.subr.mxu1 %v3164_v6 }
0x1044   :  { %4278 = vmatpush3.msra.mxu0 %v5630_v7  ;;  %v3163_v7 = vld [vmem:[#allocation15 + $0x70] sm:$0xff]  ;;  %4353 = vmatpush3.msra.mxu1 %v3164_v6 }
0x1045   :  { %4317 = vmatprep.subr.mxu0 %v3064_v27  ;;  %4354 = vmatprep.subr.mxu1 %v3163_v7 }
0x1046   :  { %4355 = vmatpush3.msra.mxu1 %v3163_v7 }
0x1047   :  { %4356 = vmatprep.subr.mxu1 %v3162_v35 }
0x1048   :  { %4357 = vmatpush3.msra.mxu1 %v3162_v35 }
0x1049   :  { %4358 = vmatprep.subr.mxu1 %v3161_v58 }
0x104a   :  { %4359 = vmatpush3.msra.mxu1 %v3161_v58 }
0x104b   :  { %4360 = vmatprep.subr.mxu1 %v3160_v62 }
0x104c   :  { %4361 = vmatpush3.msra.mxu1 %v3160_v62 }
0x104d   :  { %4362 = vmatprep.subr.mxu1 %v3159_v36 }
0x104e   :  { %4363 = vmatpush3.msra.mxu1 %v3159_v36 }
0x104f   :  { %4364 = vmatprep.subr.mxu1 %v3158_v18 }
0x1050   :  { %4365 = vmatpush3.msra.mxu1 %v3158_v18 }
0x1051   :  { %4366 = vmatprep.subr.mxu1 %v3157_v37 }
0x1052   :  { %4367 = vmatpush3.msra.mxu1 %v3157_v37 }
0x1053   :  { %4368 = vmatprep.subr.mxu1 %v3156_v38 }
0x1054   :  { %4369 = vmatpush3.msra.mxu1 %v3156_v38 }
0x1055   :  { %4370 = vmatprep.subr.mxu1 %v3155_v39 }
0x1056   :  { %4371 = vmatpush3.msra.mxu1 %v3155_v39 }
0x1057   :  { %4372 = vmatprep.subr.mxu1 %v3154_v40 }
0x1058   :  { %4373 = vmatpush3.msra.mxu1 %v3154_v40 }
0x1059   :  { %4374 = vmatprep.subr.mxu1 %v3153_v41 }
0x105a   :  { %4375 = vmatpush3.msra.mxu1 %v3153_v41 }
0x105b   :  { %4376 = vmatprep.subr.mxu1 %v3152_v12 }
0x105c   :  { %4377 = vmatpush3.msra.mxu1 %v3152_v12 }
0x105d   :  { %4378 = vmatprep.subr.mxu1 %v3151_v15 }
0x105e   :  { %4379 = vmatpush3.msra.mxu1 %v3151_v15 }
0x10e5   :  { %v4246_v28 = vpop.f32.mrf.mxu0 }
0x10e7   :  { %v2882_v30 = vpop.f32.mrf.mxu0 }
0x10e8   :  { %4279 = vmatprep.mubr.f32.mxu0 %v2882_v30 }
0x10e9   :  { %4280 = vmatmul.mubr.f32.vlgmr.msra.gmra.mxu0 %v4246_v28 }
0x10ea   :  { %4318 = vmatpush3.msra.mxu0 %v3064_v27 }
0x10eb   :  { %4319 = vmatprep.subr.mxu0 %v3063_v53 }
0x10ec   :  { %4320 = vmatpush3.msra.mxu0 %v3063_v53 }
0x10ed   :  { %4321 = vmatprep.subr.mxu0 %v3062_v54 }
0x10ee   :  { %4322 = vmatpush3.msra.mxu0 %v3062_v54 }
0x10ef   :  { %4323 = vmatprep.subr.mxu0 %v3061_v55 }
0x10f0   :  { %4324 = vmatpush3.msra.mxu0 %v3061_v55 }
0x10f1   :  { %4325 = vmatprep.subr.mxu0 %v3060_v56 }
0x10f2   :  { %4326 = vmatpush3.msra.mxu0 %v3060_v56 }
0x10f3   :  { %4327 = vmatprep.subr.mxu0 %v3059_v57 }
0x10f4   :  { %4328 = vmatpush3.msra.mxu0 %v3059_v57 }
0x10f5   :  { %4329 = vmatprep.subr.mxu0 %v3058_v59 }
0x10f6   :  { %4330 = vmatpush3.msra.mxu0 %v3058_v59 }
0x10f7   :  { %4331 = vmatprep.subr.mxu0 %v3057_v60 }
0x10f8   :  { %4332 = vmatpush3.msra.mxu0 %v3057_v60 }
0x10f9   :  { %4333 = vmatprep.subr.mxu0 %v3056_v61 }
0x10fa   :  { %4334 = vmatpush3.msra.mxu0 %v3056_v61 }
0x10fb   :  { %4335 = vmatprep.subr.mxu0 %v3055_v63 }
0x10fc   :  { %4336 = vmatpush3.msra.mxu0 %v3055_v63 }
0x10fd   :  { %4337 = vmatprep.subr.mxu0 %v3054_v0 }
0x10fe   :  { %4338 = vmatpush3.msra.mxu0 %v3054_v0 }
0x10ff   :  { %4339 = vmatprep.subr.mxu0 %v3053_v1 }
0x1100   :  { %4340 = vmatpush3.msra.mxu0 %v3053_v1 }
0x1101   :  { %4341 = vmatprep.subr.mxu0 %v3052_v2 }
0x1102   :  { %4342 = vmatpush3.msra.mxu0 %v3052_v2 }
0x1103   :  { %4343 = vmatprep.subr.mxu0 %v3051_v3 }
0x1104   :  { %4344 = vmatpush3.msra.mxu0 %v3051_v3 }
0x1105   :  { %4345 = vmatprep.subr.mxu0 %v3050_v4 }
0x1106   :  { %4346 = vmatpush3.msra.mxu0 %v3050_v4 }
0x1107   :  { %4347 = vmatprep.subr.mxu0 %v3049_v5 }
0x1108   :  { %4348 = vmatpush3.msra.mxu0 %v3049_v5 }
0x11a9   :  { %v4281_v43 = vpop.f32.mrf.mxu0 }
0x11aa   :  { %v2967_v44 = vadd.f32 %v4281_v43, %v5959_v48  ;;  %v3150_v48 = vld [vmem:[#allocation15 + $0x8] sm:$0xff] }
0x11ab   :  { %v2957_v45 = vpop.f32.mrf.mxu0  ;;  %4380 = vmatprep.subr.mxu1 %v3150_v48 }
0x11ac   :  { %v3044_v46 = vadd.f32 %v4316_v42, %v2967_v44  ;;  %v2966_v47 = vadd.f32 %v2957_v45, %v5960_v51  ;;  %4381 = vmatpush3.msra.mxu1 %v3150_v48  ;;  %v3309_v51 = vld [vmem:[%s5745_s23] ss:$0 sm:$0xff] }
0x11ad   :  { %4382 = vmatprep.subr.mxu1 %v3149_v22 }
0x11ae   :  { %v3043_v50 = vadd.f32 %v3034_v49, %v2966_v47  ;;  %v3046_v52 = vadd.f32 %v3044_v46, %v5643_v34  ;;  %4383 = vmatpush3.msra.mxu1 %v3149_v22 }
0x11b0   :  { %v3045_v8 = vadd.f32 %v3043_v50, %v5638_v23  ;;  %v3048_v11 = vmax.f32 %v3046_v52, 0.0 }
0x11b2   :  { %v3047_v9 = vmax.f32 %v3045_v8, 0.0 }
0x11b4   :  { %4349 = vmatprep.mubr.f32.mxu0 %v3047_v9 }
0x11b5   :  { %4350 = vmatmul.mubr.f32.vlgmr.msra.gmra.mxu0 %v3048_v11 }
0x1275   :  { %v4351_v23 = vpop.f32.mrf.mxu0 }
0x1276   :  { %v3144_v34 = vadd.f32 %v4351_v23, %v3309_v51 }
0x1277   :  { %v3138_v13 = vpop.f32.mrf.mxu0 }
0x1278   :  { %v3139_v17 = vadd.f32 %v3309_v51, %v3138_v13  ;;  %v3148_v33 = vmax.f32 %v3144_v34, 0.0 }
0x127a   :  { %v3147_v26 = vmax.f32 %v3139_v17, 0.0 }
0x127c   :  { %4384 = vmatprep.mubr.f32.mxu1 %v3147_v26 }
0x127d   :  { %4385 = vmatmul.mubr.f32.vlgmr.msra.gmra.mxu1 %v3148_v33 }
0x133d   :  { %v4386_v29 = vpop.f32.mrf.mxu1 }
0x133e   :  { %v3244_v14 = vadd.f32 %v4386_v29, %v3310_v21 }
0x133f   :  { %v3238_v10 = vpop.f32.mrf.mxu1 }
0x1340   :  { %3248 = vst [vmem:[%s5748_s26 + $0x8] sm:$0xff] %v3244_v14  ;;  %v3239_v31 = vadd.f32 %v3310_v21, %v3238_v10 }
0x1342   :  { %3247 = vst [vmem:[%s5748_s26] sm:$0xff] %v3239_v31 }
0x1343   :  { %3253 = vsyncpa [#allocation3], 1 }
0x1344   :  { %3254 = vsyncpa [#allocation5], 1 }
0x1345   :  { %3255 = vsyncpa [#allocation8], 1 }
0x1346   :  { %3256 = vsyncpa [#allocation11], 1 }
0x1347   :  { %3257 = vsyncpa [#allocation14], 1 }

</bundles_post_ra>
